<compile_context>
chip_gen: v5e
topology: v5e:2x2
jax: 0.10.0
libtpu: 0.0.40
codegen_flags: <defaults>
</compile_context>

<pallas_src>
import functools

import jax
import jax.numpy as jnp
import numpy as np
from jax.experimental import pallas as pl
from jax.experimental.pallas import tpu as pltpu


# ----------------------------- Pallas kernel --------------------------------
def forecastnet_kernel(src_ref, w_ref, b_ref, out_ref, *, num_layers,
                       hidden_size, num_features, output_window, seq_len,
                       batch, w_offsets, w_sizes):
    L, H, F = num_layers, hidden_size, num_features
    T, B, OW = seq_len, batch, output_window
    f32 = jnp.float32

    # ---- unpack the two parameter slabs (all slices are static, hoisted) ----
    w_all = w_ref[...]                       # (sum_K_padded, 4H)
    b_all = b_ref[...]                       # (2L+2, 4H)

    def wblk(idx):
        off, n = w_offsets[idx], w_sizes[idx]
        return w_all[off:off + n, :]

    # weight block order: [wih0e, whh0e, enc_rest..., w0d_cat, wfbcat0d, dec_rest...]
    wih0e = wblk(0)                                          # (F, 4H)
    whh0e = wblk(1)                                          # (H, 4H)
    enc_rest_w = [wblk(2 + l) for l in range(L - 1)]         # (2H, 4H) each
    w0d_cat = wblk(2 + (L - 1))                              # (F+H, 4H)
    wfbcat0d = wblk(3 + (L - 1))                             # (2H, 4H)
    dec_rest_w = [wblk(4 + (L - 1) + l) for l in range(L - 1)]

    # bias rows: [b0e, enc_rest (L-1), b0d, bfb0d, dec_rest (L-1), head]
    b0e = b_all[0:1, :]
    enc_rest_b = [b_all[1 + l:2 + l, :] for l in range(L - 1)]
    b0d = b_all[L:L + 1, :]
    bfb0d = b_all[L + 1:L + 2, :]
    dec_rest_b = [b_all[L + 2 + l:L + 3 + l, :] for l in range(L - 1)]
    head = b_all[2 * L + 1:2 * L + 2, :]
    wproj = head[:, 0:F]                                     # (1, F)
    bproj = head[:, F:2 * F]                                 # (1, F)
    wfc = head[:, 2 * F:2 * F + H]                           # (1, H)
    bfc = head[:, 2 * F + H:2 * F + H + 1]                   # (1, 1)

    # Gate order inside every fused weight/bias is [i, f, o, g]:
    # sigmoid only over the first 3H lanes, tanh only over the last H lanes.
    def gates_to_hc(gates, c):
        sg = jax.nn.sigmoid(gates[:, 0:3 * H])
        g = jnp.tanh(gates[:, 3 * H:4 * H])
        i = sg[:, 0:H]
        f = sg[:, H:2 * H]
        o = sg[:, 2 * H:3 * H]
        c_new = f * c + i * g
        return o * jnp.tanh(c_new), c_new

    def fused_cell(x, h, c, wcat, b):
        # Single MXU matmul per cell: gates = [x, h] @ [W_ih^T; W_hh^T] + b.
        xh = jnp.concatenate([x, h], axis=1)
        gates = jnp.dot(xh, wcat, preferred_element_type=f32) + b
        return gates_to_hc(gates, c)

    # ------------------------------ Encoder ----------------------------------
    # All layer-0 input projections in one batched matmul (bias folded in).
    src_all = src_ref[...]                                   # (T*B, F)
    x0e_all = (jnp.dot(src_all, wih0e, preferred_element_type=f32)
               + b0e)                                        # (T*B, 4H)

    h = [jnp.zeros((B, H), f32) for _ in range(L)]
    c = [jnp.zeros((B, H), f32) for _ in range(L)]

    for t in range(T):
        gates0 = x0e_all[t * B:(t + 1) * B, :] + jnp.dot(
            h[0], whh0e, preferred_element_type=f32)
        h[0], c[0] = gates_to_hc(gates0, c[0])
        x = h[0]
        for l in range(1, L):
            h[l], c[l] = fused_cell(x, h[l], c[l],
                                    enc_rest_w[l - 1], enc_rest_b[l - 1])
            x = h[l]

    # --------------------- Decoder (autoregressive) --------------------------
    # TODO(synk): teacher forcing (target_seq + np.random gate) is a stochastic
    # training-time path and is not implemented; this is the inference forward.

    # Step-0 input: proj(src[:, -1, 0:1]).
    seed = src_all[(T - 1) * B:T * B, 0:1]                   # (B, 1)
    x_seed = seed * wproj + bproj                            # (B, F)

    preds = []
    for t in range(OW):
        if t == 0:
            # Single concat matmul: [x_seed, h0] @ (F+H, 4H).
            xh0 = jnp.concatenate([x_seed, h[0]], axis=1)
            gates0 = jnp.dot(xh0, w0d_cat, preferred_element_type=f32) + b0d
        else:
            # fc -> proj -> W_ih folded into one (2H, 4H) weight: the recurrence
            # depends only on previous hidden states, never on `pred`.
            xh0 = jnp.concatenate([h[L - 1], h[0]], axis=1)  # (B, 2H)
            gates0 = jnp.dot(xh0, wfbcat0d, preferred_element_type=f32) + bfb0d
        h[0], c[0] = gates_to_hc(gates0, c[0])
        x = h[0]
        for l in range(1, L):
            h[l], c[l] = fused_cell(x, h[l], c[l],
                                    dec_rest_w[l - 1], dec_rest_b[l - 1])
            x = h[l]
        # fc head: off the critical path, only feeds the final output store.
        preds.append(jnp.sum(h[L - 1] * wfc, axis=1, keepdims=True) + bfc)

    # Single store of the whole prediction slab (no per-step masked stores).
    out_ref[...] = jnp.concatenate(preds, axis=1)            # (B, OW)


# ------------------------------ JAX wrapper ----------------------------------
def forecastnet_forward(src, fused, *, hidden_size, output_window):
    B, T, F = src.shape
    L = fused["num_layers"]

    # Layout plumbing only: row t*B + b == src[b, t, :].
    src_flat = jnp.transpose(src, (1, 0, 2)).reshape(T * B, F)

    kernel = functools.partial(
        forecastnet_kernel,
        num_layers=L,
        hidden_size=hidden_size,
        num_features=F,
        output_window=output_window,
        seq_len=T,
        batch=B,
        w_offsets=fused["w_offsets"],
        w_sizes=fused["w_sizes"],
    )

    vmem = pl.BlockSpec(memory_space=pltpu.MemorySpace.VMEM)
    out = pl.pallas_call(
        kernel,
        out_shape=jax.ShapeDtypeStruct((B, output_window), jnp.float32),
        in_specs=[vmem, vmem, vmem],
        out_specs=vmem,
    )(src_flat, fused["w_slab"], fused["b_slab"])
    return out[:, :, None]                                   # (B, OW, 1)


# ---------------------- Weight fusion (done once, in JAX glue) ----------------
def prepare_fused_params(raw, *, num_features, hidden_size):
    H, F = hidden_size, num_features
    HP = jax.lax.Precision.HIGHEST
    enc, dec = raw["enc"], raw["dec"]
    L = len(enc)
    assert 2 * F + H + 1 <= 4 * H, "head row packing needs 2F+H+1 <= 4H"

    def reorder_gates(a):
        # PyTorch gate order [i, f, g, o] -> [i, f, o, g] along the last dim,
        # so the kernel can run one sigmoid over 3H lanes + one tanh over H.
        return jnp.concatenate(
            [a[..., 0:2 * H], a[..., 3 * H:4 * H], a[..., 2 * H:3 * H]],
            axis=-1)

    def cat_layer(w_ih, w_hh, b_ih, b_hh):
        return (jnp.concatenate([w_ih.T, w_hh.T], axis=0),   # (2H, 4H)
                (b_ih + b_hh).reshape(1, 4 * H))

    # Encoder layer 0 kept split so the x-projection can be batched over time.
    w_ih0e, w_hh0e, bih0e, bhh0e = enc[0]
    wih0e = w_ih0e.T                                         # (F, 4H)
    whh0e = w_hh0e.T                                         # (H, 4H)
    b0e = (bih0e + bhh0e).reshape(1, 4 * H)
    enc_rest = [cat_layer(*enc[l]) for l in range(1, L)]

    # Decoder layer 0: step-0 uses a single concat([x_seed, h0]) matmul.
    w_ih0d, w_hh0d, bih0d, bhh0d = dec[0]
    wih0d_t, whh0d_t = w_ih0d.T, w_hh0d.T
    b0d = (bih0d + bhh0d).reshape(1, 4 * H)
    w0d_cat = jnp.concatenate([wih0d_t, whh0d_t], axis=0)    # (F+H, 4H)

    # fc -> proj fold for the autoregressive feedback (steps >= 1):
    #   x_next = h_top @ W_fb + b_fb,  W_fb = fc.W^T * proj.W^T (outer product)
    w_fc, b_fc = raw["fc"]          # (1, H), (1,)
    w_pj, b_pj = raw["proj"]        # (F, 1), (F,)
    wproj_row = w_pj.T                                       # (1, F)
    bproj_row = b_pj.reshape(1, F)
    w_fb = w_fc.T * wproj_row                                # (H, F)
    b_fb = b_fc.reshape(1, 1) * wproj_row + bproj_row        # (1, F)
    w_a = jnp.dot(w_fb, wih0d_t, precision=HP)               # (H, 4H)
    wfbcat0d = jnp.concatenate([w_a, whh0d_t], axis=0)       # (2H, 4H)
    bfb0d = b0d + jnp.dot(b_fb, wih0d_t, precision=HP)       # (1, 4H)

    dec_rest = [cat_layer(*dec[l]) for l in range(1, L)]

    # --- gate-column reorder on everything 4H-wide ---------------------------
    wih0e, whh0e, b0e = map(reorder_gates, (wih0e, whh0e, b0e))
    enc_rest = [(reorder_gates(w), reorder_gates(b)) for w, b in enc_rest]
    w0d_cat, b0d = reorder_gates(w0d_cat), reorder_gates(b0d)
    wfbcat0d, bfb0d = reorder_gates(wfbcat0d), reorder_gates(bfb0d)
    dec_rest = [(reorder_gates(w), reorder_gates(b)) for w, b in dec_rest]

    # --- coalesce all gate weights into one (sum_K, 4H) slab ------------------
    # Each block is zero-padded to a multiple of 8 rows so the in-kernel static
    # slices stay sublane-aligned; the padded rows are never read.
    def pad8(w):
        r = (-w.shape[0]) % 8
        if r:
            w = jnp.concatenate([w, jnp.zeros((r, w.shape[1]), w.dtype)], 0)
        return w

    weight_blocks = ([wih0e, whh0e] + [w for w, _ in enc_rest]
                     + [w0d_cat, wfbcat0d] + [w for w, _ in dec_rest])
    offsets, sizes, padded, rows = [], [], [], 0
    for w in weight_blocks:
        offsets.append(rows)
        sizes.append(int(w.shape[0]))
        wp = pad8(w)
        padded.append(wp)
        rows += int(wp.shape[0])
    w_slab = jnp.concatenate(padded, axis=0)                 # (rows, 4H)

    # --- bias + head slab: one (2L+2, 4H) array -------------------------------
    head_row = jnp.zeros((1, 4 * H), jnp.float32)
    head_row = head_row.at[0, 0:F].set(wproj_row[0])
    head_row = head_row.at[0, F:2 * F].set(bproj_row[0])
    head_row = head_row.at[0, 2 * F:2 * F + H].set(w_fc[0])
    head_row = head_row.at[0, 2 * F + H].set(b_fc[0])
    bias_rows = ([b0e] + [b for _, b in enc_rest] + [b0d, bfb0d]
                 + [b for _, b in dec_rest] + [head_row])
    b_slab = jnp.concatenate(bias_rows, axis=0)              # (2L+2, 4H)

    return {
        "num_layers": L,
        "w_slab": w_slab,
        "b_slab": b_slab,
        "w_offsets": tuple(offsets),
        "w_sizes": tuple(sizes),
    }


# ------------------------- Deterministic param init --------------------------
def init_raw_params(key, num_features, hidden_size, num_layers):
    k = 1.0 / np.sqrt(hidden_size)

    def uniform(key, shape):
        return jax.random.uniform(key, shape, jnp.float32, minval=-k, maxval=k)

    keys = iter(jax.random.split(key, 8 * num_layers + 4))

    def lstm():
        layers = []
        for l in range(num_layers):
            in_size = num_features if l == 0 else hidden_size
            w_ih = uniform(next(keys), (4 * hidden_size, in_size))
            w_hh = uniform(next(keys), (4 * hidden_size, hidden_size))
            b_ih = uniform(next(keys), (4 * hidden_size,))
            b_hh = uniform(next(keys), (4 * hidden_size,))
            layers.append((w_ih, w_hh, b_ih, b_hh))
        return layers

    enc = lstm()
    dec = lstm()
    w_fc = uniform(next(keys), (1, hidden_size))             # fc.weight
    b_fc = uniform(next(keys), (1,))                         # fc.bias
    w_proj = uniform(next(keys), (num_features, 1))          # proj.weight
    b_proj = uniform(next(keys), (num_features,))            # proj.bias
    return {"enc": enc, "dec": dec, "fc": (w_fc, b_fc), "proj": (w_proj, b_proj)}


# --------------------------- Pure-JAX reference -------------------------------
def reference_forward(src, raw, *, hidden_size, output_window):
    B, T, F = src.shape
    H = hidden_size
    HP = jax.lax.Precision.HIGHEST
    enc, dec = raw["enc"], raw["dec"]
    L = len(enc)
    w_fc, b_fc = raw["fc"]
    w_pj, b_pj = raw["proj"]

    def cell(x, h, c, w_ih, w_hh, b_ih, b_hh):
        gates = (jnp.dot(x, w_ih.T, precision=HP) + b_ih
                 + jnp.dot(h, w_hh.T, precision=HP) + b_hh)
        i = jax.nn.sigmoid(gates[:, 0:H])
        f = jax.nn.sigmoid(gates[:, H:2 * H])
        g = jnp.tanh(gates[:, 2 * H:3 * H])
        o = jax.nn.sigmoid(gates[:, 3 * H:4 * H])
        c_new = f * c + i * g
        return o * jnp.tanh(c_new), c_new

    h = [jnp.zeros((B, H), jnp.float32) for _ in range(L)]
    c = [jnp.zeros((B, H), jnp.float32) for _ in range(L)]
    for t in range(T):
        x = src[:, t, :]
        for l in range(L):
            h[l], c[l] = cell(x, h[l], c[l], *enc[l])
            x = h[l]

    dec_in = src[:, T - 1, 0:1]
    outs = []
    for _ in range(output_window):
        x = jnp.dot(dec_in, w_pj.T, precision=HP) + b_pj
        for l in range(L):
            h[l], c[l] = cell(x, h[l], c[l], *dec[l])
            x = h[l]
        pred = jnp.dot(x, w_fc.T, precision=HP) + b_fc
        outs.append(pred[:, None, :])
        dec_in = pred
    return jnp.concatenate(outs, axis=1)


# ------------------------------------ main ------------------------------------
if __name__ == "__main__":
    batch = 2
    num_features = 4
    seq_len = 8
    hidden_size = 32
    num_layers = 2
    output_window = 4

    key = jax.random.PRNGKey(0)
    k_src, k_params = jax.random.split(key)

    src = jax.random.normal(k_src, (batch, seq_len, num_features), jnp.float32)
    raw = init_raw_params(k_params, num_features, hidden_size, num_layers)
    fused = prepare_fused_params(raw, num_features=num_features,
                                 hidden_size=hidden_size)

    out = forecastnet_forward(src, fused, hidden_size=hidden_size,
                              output_window=output_window)
    out = jax.block_until_ready(out)

    ref = reference_forward(src, raw, hidden_size=hidden_size,
                            output_window=output_window)
    assert out.shape == (batch, output_window, 1)
    np.testing.assert_allclose(np.asarray(out), np.asarray(ref),
                               rtol=2e-4, atol=2e-4)

    print("KERNEL_OK")
</pallas_src>

<mosaic_0001>
module attributes {stable_mosaic.version = 11 : i64} {
  func.func @forecastnet_kernel(%arg0: memref<16x4xf32, #tpu.memory_space<vmem>>, %arg1: memref<272x128xf32, #tpu.memory_space<vmem>>, %arg2: memref<6x128xf32, #tpu.memory_space<vmem>>, %arg3: memref<2x4xf32, #tpu.memory_space<vmem>>) attributes {dimension_semantics = [], scalar_prefetch = 0 : i64, scratch_operands = 0 : i64, tpu.core_type = #tpu.core_type<tc>} {
    %c0 = arith.constant 0 : index
    %c0_0 = arith.constant 0 : index
    %0 = vector.load %arg1[%c0, %c0_0] : memref<272x128xf32, #tpu.memory_space<vmem>>, vector<272x128xf32>
    %c0_1 = arith.constant 0 : index
    %c0_2 = arith.constant 0 : index
    %1 = vector.load %arg2[%c0_1, %c0_2] : memref<6x128xf32, #tpu.memory_space<vmem>>, vector<6x128xf32>
    %2 = vector.extract_strided_slice %0 {offsets = [0, 0], sizes = [4, 128], strides = [1, 1]} : vector<272x128xf32> to vector<4x128xf32>
    %3 = vector.extract_strided_slice %0 {offsets = [8, 0], sizes = [32, 128], strides = [1, 1]} : vector<272x128xf32> to vector<32x128xf32>
    %4 = vector.extract_strided_slice %0 {offsets = [40, 0], sizes = [64, 128], strides = [1, 1]} : vector<272x128xf32> to vector<64x128xf32>
    %5 = vector.extract_strided_slice %0 {offsets = [104, 0], sizes = [36, 128], strides = [1, 1]} : vector<272x128xf32> to vector<36x128xf32>
    %6 = vector.extract_strided_slice %0 {offsets = [144, 0], sizes = [64, 128], strides = [1, 1]} : vector<272x128xf32> to vector<64x128xf32>
    %7 = vector.extract_strided_slice %0 {offsets = [208, 0], sizes = [64, 128], strides = [1, 1]} : vector<272x128xf32> to vector<64x128xf32>
    %8 = vector.extract_strided_slice %1 {offsets = [0, 0], sizes = [1, 128], strides = [1, 1]} : vector<6x128xf32> to vector<1x128xf32>
    %9 = vector.extract_strided_slice %1 {offsets = [1, 0], sizes = [1, 128], strides = [1, 1]} : vector<6x128xf32> to vector<1x128xf32>
    %10 = vector.extract_strided_slice %1 {offsets = [2, 0], sizes = [1, 128], strides = [1, 1]} : vector<6x128xf32> to vector<1x128xf32>
    %11 = vector.extract_strided_slice %1 {offsets = [3, 0], sizes = [1, 128], strides = [1, 1]} : vector<6x128xf32> to vector<1x128xf32>
    %12 = vector.extract_strided_slice %1 {offsets = [4, 0], sizes = [1, 128], strides = [1, 1]} : vector<6x128xf32> to vector<1x128xf32>
    %13 = vector.extract_strided_slice %1 {offsets = [5, 0], sizes = [1, 128], strides = [1, 1]} : vector<6x128xf32> to vector<1x128xf32>
    %14 = vector.extract_strided_slice %13 {offsets = [0, 0], sizes = [1, 4], strides = [1, 1]} : vector<1x128xf32> to vector<1x4xf32>
    %15 = vector.extract_strided_slice %13 {offsets = [0, 4], sizes = [1, 4], strides = [1, 1]} : vector<1x128xf32> to vector<1x4xf32>
    %16 = vector.extract_strided_slice %13 {offsets = [0, 8], sizes = [1, 32], strides = [1, 1]} : vector<1x128xf32> to vector<1x32xf32>
    %17 = vector.extract_strided_slice %13 {offsets = [0, 40], sizes = [1, 1], strides = [1, 1]} : vector<1x128xf32> to vector<1x1xf32>
    %c0_3 = arith.constant 0 : index
    %c0_4 = arith.constant 0 : index
    %18 = vector.load %arg0[%c0_3, %c0_4] : memref<16x4xf32, #tpu.memory_space<vmem>>, vector<16x4xf32>
    %cst = arith.constant dense<0.000000e+00> : vector<16x128xf32>
    %19 = tpu.matmul %18, %2, %cst {dimension_numbers = #tpu.dot_dimension_numbers<[1], [0], [0], [1], [0, 0, 1, 1], [], []>} : vector<16x4xf32>, vector<4x128xf32>, vector<16x128xf32> -> vector<16x128xf32>
    %20 = vector.broadcast %8 : vector<1x128xf32> to vector<16x128xf32>
    %21 = arith.addf %19, %20 : vector<16x128xf32>
    %cst_5 = arith.constant 0.000000e+00 : f32
    %22 = vector.broadcast %cst_5 : f32 to vector<2x32xf32>
    %cst_6 = arith.constant 0.000000e+00 : f32
    %23 = vector.broadcast %cst_6 : f32 to vector<2x32xf32>
    %cst_7 = arith.constant 0.000000e+00 : f32
    %24 = vector.broadcast %cst_7 : f32 to vector<2x32xf32>
    %cst_8 = arith.constant 0.000000e+00 : f32
    %25 = vector.broadcast %cst_8 : f32 to vector<2x32xf32>
    %26 = vector.extract_strided_slice %21 {offsets = [0, 0], sizes = [2, 128], strides = [1, 1]} : vector<16x128xf32> to vector<2x128xf32>
    %cst_9 = arith.constant dense<0.000000e+00> : vector<2x128xf32>
    %27 = tpu.matmul %22, %3, %cst_9 {dimension_numbers = #tpu.dot_dimension_numbers<[1], [0], [0], [1], [0, 0, 1, 1], [], []>} : vector<2x32xf32>, vector<32x128xf32>, vector<2x128xf32> -> vector<2x128xf32>
    %28 = arith.addf %26, %27 : vector<2x128xf32>
    %29 = vector.extract_strided_slice %28 {offsets = [0, 0], sizes = [2, 96], strides = [1, 1]} : vector<2x128xf32> to vector<2x96xf32>
    %30 = arith.negf %29 : vector<2x96xf32>
    %31 = math.exp %30 : vector<2x96xf32>
    %cst_10 = arith.constant 1.000000e+00 : f32
    %32 = vector.broadcast %cst_10 : f32 to vector<2x96xf32>
    %33 = arith.addf %32, %31 : vector<2x96xf32>
    %34 = arith.divf %32, %33 : vector<2x96xf32>
    %35 = vector.extract_strided_slice %28 {offsets = [0, 96], sizes = [2, 32], strides = [1, 1]} : vector<2x128xf32> to vector<2x32xf32>
    %36 = math.tanh %35 : vector<2x32xf32>
    %37 = vector.extract_strided_slice %34 {offsets = [0, 0], sizes = [2, 32], strides = [1, 1]} : vector<2x96xf32> to vector<2x32xf32>
    %38 = vector.extract_strided_slice %34 {offsets = [0, 32], sizes = [2, 32], strides = [1, 1]} : vector<2x96xf32> to vector<2x32xf32>
    %39 = vector.extract_strided_slice %34 {offsets = [0, 64], sizes = [2, 32], strides = [1, 1]} : vector<2x96xf32> to vector<2x32xf32>
    %40 = arith.mulf %38, %24 : vector<2x32xf32>
    %41 = arith.mulf %37, %36 : vector<2x32xf32>
    %42 = arith.addf %40, %41 : vector<2x32xf32>
    %43 = math.tanh %42 : vector<2x32xf32>
    %44 = arith.mulf %39, %43 : vector<2x32xf32>
    %45 = tpu.concatenate %44, %23 in 1 : vector<2x32xf32>, vector<2x32xf32> -> vector<2x64xf32>
    %cst_11 = arith.constant dense<0.000000e+00> : vector<2x128xf32>
    %46 = tpu.matmul %45, %4, %cst_11 {dimension_numbers = #tpu.dot_dimension_numbers<[1], [0], [0], [1], [0, 0, 1, 1], [], []>} : vector<2x64xf32>, vector<64x128xf32>, vector<2x128xf32> -> vector<2x128xf32>
    %47 = vector.broadcast %9 : vector<1x128xf32> to vector<2x128xf32>
    %48 = arith.addf %46, %47 : vector<2x128xf32>
    %49 = vector.extract_strided_slice %48 {offsets = [0, 0], sizes = [2, 96], strides = [1, 1]} : vector<2x128xf32> to vector<2x96xf32>
    %50 = arith.negf %49 : vector<2x96xf32>
    %51 = math.exp %50 : vector<2x96xf32>
    %cst_12 = arith.constant 1.000000e+00 : f32
    %52 = vector.broadcast %cst_12 : f32 to vector<2x96xf32>
    %53 = arith.addf %52, %51 : vector<2x96xf32>
    %54 = arith.divf %52, %53 : vector<2x96xf32>
    %55 = vector.extract_strided_slice %48 {offsets = [0, 96], sizes = [2, 32], strides = [1, 1]} : vector<2x128xf32> to vector<2x32xf32>
    %56 = math.tanh %55 : vector<2x32xf32>
    %57 = vector.extract_strided_slice %54 {offsets = [0, 0], sizes = [2, 32], strides = [1, 1]} : vector<2x96xf32> to vector<2x32xf32>
    %58 = vector.extract_strided_slice %54 {offsets = [0, 32], sizes = [2, 32], strides = [1, 1]} : vector<2x96xf32> to vector<2x32xf32>
    %59 = vector.extract_strided_slice %54 {offsets = [0, 64], sizes = [2, 32], strides = [1, 1]} : vector<2x96xf32> to vector<2x32xf32>
    %60 = arith.mulf %58, %25 : vector<2x32xf32>
    %61 = arith.mulf %57, %56 : vector<2x32xf32>
    %62 = arith.addf %60, %61 : vector<2x32xf32>
    %63 = math.tanh %62 : vector<2x32xf32>
    %64 = arith.mulf %59, %63 : vector<2x32xf32>
    %65 = vector.extract_strided_slice %21 {offsets = [2, 0], sizes = [2, 128], strides = [1, 1]} : vector<16x128xf32> to vector<2x128xf32>
    %cst_13 = arith.constant dense<0.000000e+00> : vector<2x128xf32>
    %66 = tpu.matmul %44, %3, %cst_13 {dimension_numbers = #tpu.dot_dimension_numbers<[1], [0], [0], [1], [0, 0, 1, 1], [], []>} : vector<2x32xf32>, vector<32x128xf32>, vector<2x128xf32> -> vector<2x128xf32>
    %67 = arith.addf %65, %66 : vector<2x128xf32>
    %68 = vector.extract_strided_slice %67 {offsets = [0, 0], sizes = [2, 96], strides = [1, 1]} : vector<2x128xf32> to vector<2x96xf32>
    %69 = arith.negf %68 : vector<2x96xf32>
    %70 = math.exp %69 : vector<2x96xf32>
    %cst_14 = arith.constant 1.000000e+00 : f32
    %71 = vector.broadcast %cst_14 : f32 to vector<2x96xf32>
    %72 = arith.addf %71, %70 : vector<2x96xf32>
    %73 = arith.divf %71, %72 : vector<2x96xf32>
    %74 = vector.extract_strided_slice %67 {offsets = [0, 96], sizes = [2, 32], strides = [1, 1]} : vector<2x128xf32> to vector<2x32xf32>
    %75 = math.tanh %74 : vector<2x32xf32>
    %76 = vector.extract_strided_slice %73 {offsets = [0, 0], sizes = [2, 32], strides = [1, 1]} : vector<2x96xf32> to vector<2x32xf32>
    %77 = vector.extract_strided_slice %73 {offsets = [0, 32], sizes = [2, 32], strides = [1, 1]} : vector<2x96xf32> to vector<2x32xf32>
    %78 = vector.extract_strided_slice %73 {offsets = [0, 64], sizes = [2, 32], strides = [1, 1]} : vector<2x96xf32> to vector<2x32xf32>
    %79 = arith.mulf %77, %42 : vector<2x32xf32>
    %80 = arith.mulf %76, %75 : vector<2x32xf32>
    %81 = arith.addf %79, %80 : vector<2x32xf32>
    %82 = math.tanh %81 : vector<2x32xf32>
    %83 = arith.mulf %78, %82 : vector<2x32xf32>
    %84 = tpu.concatenate %83, %64 in 1 : vector<2x32xf32>, vector<2x32xf32> -> vector<2x64xf32>
    %cst_15 = arith.constant dense<0.000000e+00> : vector<2x128xf32>
    %85 = tpu.matmul %84, %4, %cst_15 {dimension_numbers = #tpu.dot_dimension_numbers<[1], [0], [0], [1], [0, 0, 1, 1], [], []>} : vector<2x64xf32>, vector<64x128xf32>, vector<2x128xf32> -> vector<2x128xf32>
    %86 = vector.broadcast %9 : vector<1x128xf32> to vector<2x128xf32>
    %87 = arith.addf %85, %86 : vector<2x128xf32>
    %88 = vector.extract_strided_slice %87 {offsets = [0, 0], sizes = [2, 96], strides = [1, 1]} : vector<2x128xf32> to vector<2x96xf32>
    %89 = arith.negf %88 : vector<2x96xf32>
    %90 = math.exp %89 : vector<2x96xf32>
    %cst_16 = arith.constant 1.000000e+00 : f32
    %91 = vector.broadcast %cst_16 : f32 to vector<2x96xf32>
    %92 = arith.addf %91, %90 : vector<2x96xf32>
    %93 = arith.divf %91, %92 : vector<2x96xf32>
    %94 = vector.extract_strided_slice %87 {offsets = [0, 96], sizes = [2, 32], strides = [1, 1]} : vector<2x128xf32> to vector<2x32xf32>
    %95 = math.tanh %94 : vector<2x32xf32>
    %96 = vector.extract_strided_slice %93 {offsets = [0, 0], sizes = [2, 32], strides = [1, 1]} : vector<2x96xf32> to vector<2x32xf32>
    %97 = vector.extract_strided_slice %93 {offsets = [0, 32], sizes = [2, 32], strides = [1, 1]} : vector<2x96xf32> to vector<2x32xf32>
    %98 = vector.extract_strided_slice %93 {offsets = [0, 64], sizes = [2, 32], strides = [1, 1]} : vector<2x96xf32> to vector<2x32xf32>
    %99 = arith.mulf %97, %62 : vector<2x32xf32>
    %100 = arith.mulf %96, %95 : vector<2x32xf32>
    %101 = arith.addf %99, %100 : vector<2x32xf32>
    %102 = math.tanh %101 : vector<2x32xf32>
    %103 = arith.mulf %98, %102 : vector<2x32xf32>
    %104 = vector.extract_strided_slice %21 {offsets = [4, 0], sizes = [2, 128], strides = [1, 1]} : vector<16x128xf32> to vector<2x128xf32>
    %cst_17 = arith.constant dense<0.000000e+00> : vector<2x128xf32>
    %105 = tpu.matmul %83, %3, %cst_17 {dimension_numbers = #tpu.dot_dimension_numbers<[1], [0], [0], [1], [0, 0, 1, 1], [], []>} : vector<2x32xf32>, vector<32x128xf32>, vector<2x128xf32> -> vector<2x128xf32>
    %106 = arith.addf %104, %105 : vector<2x128xf32>
    %107 = vector.extract_strided_slice %106 {offsets = [0, 0], sizes = [2, 96], strides = [1, 1]} : vector<2x128xf32> to vector<2x96xf32>
    %108 = arith.negf %107 : vector<2x96xf32>
    %109 = math.exp %108 : vector<2x96xf32>
    %cst_18 = arith.constant 1.000000e+00 : f32
    %110 = vector.broadcast %cst_18 : f32 to vector<2x96xf32>
    %111 = arith.addf %110, %109 : vector<2x96xf32>
    %112 = arith.divf %110, %111 : vector<2x96xf32>
    %113 = vector.extract_strided_slice %106 {offsets = [0, 96], sizes = [2, 32], strides = [1, 1]} : vector<2x128xf32> to vector<2x32xf32>
    %114 = math.tanh %113 : vector<2x32xf32>
    %115 = vector.extract_strided_slice %112 {offsets = [0, 0], sizes = [2, 32], strides = [1, 1]} : vector<2x96xf32> to vector<2x32xf32>
    %116 = vector.extract_strided_slice %112 {offsets = [0, 32], sizes = [2, 32], strides = [1, 1]} : vector<2x96xf32> to vector<2x32xf32>
    %117 = vector.extract_strided_slice %112 {offsets = [0, 64], sizes = [2, 32], strides = [1, 1]} : vector<2x96xf32> to vector<2x32xf32>
    %118 = arith.mulf %116, %81 : vector<2x32xf32>
    %119 = arith.mulf %115, %114 : vector<2x32xf32>
    %120 = arith.addf %118, %119 : vector<2x32xf32>
    %121 = math.tanh %120 : vector<2x32xf32>
    %122 = arith.mulf %117, %121 : vector<2x32xf32>
    %123 = tpu.concatenate %122, %103 in 1 : vector<2x32xf32>, vector<2x32xf32> -> vector<2x64xf32>
    %cst_19 = arith.constant dense<0.000000e+00> : vector<2x128xf32>
    %124 = tpu.matmul %123, %4, %cst_19 {dimension_numbers = #tpu.dot_dimension_numbers<[1], [0], [0], [1], [0, 0, 1, 1], [], []>} : vector<2x64xf32>, vector<64x128xf32>, vector<2x128xf32> -> vector<2x128xf32>
    %125 = vector.broadcast %9 : vector<1x128xf32> to vector<2x128xf32>
    %126 = arith.addf %124, %125 : vector<2x128xf32>
    %127 = vector.extract_strided_slice %126 {offsets = [0, 0], sizes = [2, 96], strides = [1, 1]} : vector<2x128xf32> to vector<2x96xf32>
    %128 = arith.negf %127 : vector<2x96xf32>
    %129 = math.exp %128 : vector<2x96xf32>
    %cst_20 = arith.constant 1.000000e+00 : f32
    %130 = vector.broadcast %cst_20 : f32 to vector<2x96xf32>
    %131 = arith.addf %130, %129 : vector<2x96xf32>
    %132 = arith.divf %130, %131 : vector<2x96xf32>
    %133 = vector.extract_strided_slice %126 {offsets = [0, 96], sizes = [2, 32], strides = [1, 1]} : vector<2x128xf32> to vector<2x32xf32>
    %134 = math.tanh %133 : vector<2x32xf32>
    %135 = vector.extract_strided_slice %132 {offsets = [0, 0], sizes = [2, 32], strides = [1, 1]} : vector<2x96xf32> to vector<2x32xf32>
    %136 = vector.extract_strided_slice %132 {offsets = [0, 32], sizes = [2, 32], strides = [1, 1]} : vector<2x96xf32> to vector<2x32xf32>
    %137 = vector.extract_strided_slice %132 {offsets = [0, 64], sizes = [2, 32], strides = [1, 1]} : vector<2x96xf32> to vector<2x32xf32>
    %138 = arith.mulf %136, %101 : vector<2x32xf32>
    %139 = arith.mulf %135, %134 : vector<2x32xf32>
    %140 = arith.addf %138, %139 : vector<2x32xf32>
    %141 = math.tanh %140 : vector<2x32xf32>
    %142 = arith.mulf %137, %141 : vector<2x32xf32>
    %143 = vector.extract_strided_slice %21 {offsets = [6, 0], sizes = [2, 128], strides = [1, 1]} : vector<16x128xf32> to vector<2x128xf32>
    %cst_21 = arith.constant dense<0.000000e+00> : vector<2x128xf32>
    %144 = tpu.matmul %122, %3, %cst_21 {dimension_numbers = #tpu.dot_dimension_numbers<[1], [0], [0], [1], [0, 0, 1, 1], [], []>} : vector<2x32xf32>, vector<32x128xf32>, vector<2x128xf32> -> vector<2x128xf32>
    %145 = arith.addf %143, %144 : vector<2x128xf32>
    %146 = vector.extract_strided_slice %145 {offsets = [0, 0], sizes = [2, 96], strides = [1, 1]} : vector<2x128xf32> to vector<2x96xf32>
    %147 = arith.negf %146 : vector<2x96xf32>
    %148 = math.exp %147 : vector<2x96xf32>
    %cst_22 = arith.constant 1.000000e+00 : f32
    %149 = vector.broadcast %cst_22 : f32 to vector<2x96xf32>
    %150 = arith.addf %149, %148 : vector<2x96xf32>
    %151 = arith.divf %149, %150 : vector<2x96xf32>
    %152 = vector.extract_strided_slice %145 {offsets = [0, 96], sizes = [2, 32], strides = [1, 1]} : vector<2x128xf32> to vector<2x32xf32>
    %153 = math.tanh %152 : vector<2x32xf32>
    %154 = vector.extract_strided_slice %151 {offsets = [0, 0], sizes = [2, 32], strides = [1, 1]} : vector<2x96xf32> to vector<2x32xf32>
    %155 = vector.extract_strided_slice %151 {offsets = [0, 32], sizes = [2, 32], strides = [1, 1]} : vector<2x96xf32> to vector<2x32xf32>
    %156 = vector.extract_strided_slice %151 {offsets = [0, 64], sizes = [2, 32], strides = [1, 1]} : vector<2x96xf32> to vector<2x32xf32>
    %157 = arith.mulf %155, %120 : vector<2x32xf32>
    %158 = arith.mulf %154, %153 : vector<2x32xf32>
    %159 = arith.addf %157, %158 : vector<2x32xf32>
    %160 = math.tanh %159 : vector<2x32xf32>
    %161 = arith.mulf %156, %160 : vector<2x32xf32>
    %162 = tpu.concatenate %161, %142 in 1 : vector<2x32xf32>, vector<2x32xf32> -> vector<2x64xf32>
    %cst_23 = arith.constant dense<0.000000e+00> : vector<2x128xf32>
    %163 = tpu.matmul %162, %4, %cst_23 {dimension_numbers = #tpu.dot_dimension_numbers<[1], [0], [0], [1], [0, 0, 1, 1], [], []>} : vector<2x64xf32>, vector<64x128xf32>, vector<2x128xf32> -> vector<2x128xf32>
    %164 = vector.broadcast %9 : vector<1x128xf32> to vector<2x128xf32>
    %165 = arith.addf %163, %164 : vector<2x128xf32>
    %166 = vector.extract_strided_slice %165 {offsets = [0, 0], sizes = [2, 96], strides = [1, 1]} : vector<2x128xf32> to vector<2x96xf32>
    %167 = arith.negf %166 : vector<2x96xf32>
    %168 = math.exp %167 : vector<2x96xf32>
    %cst_24 = arith.constant 1.000000e+00 : f32
    %169 = vector.broadcast %cst_24 : f32 to vector<2x96xf32>
    %170 = arith.addf %169, %168 : vector<2x96xf32>
    %171 = arith.divf %169, %170 : vector<2x96xf32>
    %172 = vector.extract_strided_slice %165 {offsets = [0, 96], sizes = [2, 32], strides = [1, 1]} : vector<2x128xf32> to vector<2x32xf32>
    %173 = math.tanh %172 : vector<2x32xf32>
    %174 = vector.extract_strided_slice %171 {offsets = [0, 0], sizes = [2, 32], strides = [1, 1]} : vector<2x96xf32> to vector<2x32xf32>
    %175 = vector.extract_strided_slice %171 {offsets = [0, 32], sizes = [2, 32], strides = [1, 1]} : vector<2x96xf32> to vector<2x32xf32>
    %176 = vector.extract_strided_slice %171 {offsets = [0, 64], sizes = [2, 32], strides = [1, 1]} : vector<2x96xf32> to vector<2x32xf32>
    %177 = arith.mulf %175, %140 : vector<2x32xf32>
    %178 = arith.mulf %174, %173 : vector<2x32xf32>
    %179 = arith.addf %177, %178 : vector<2x32xf32>
    %180 = math.tanh %179 : vector<2x32xf32>
    %181 = arith.mulf %176, %180 : vector<2x32xf32>
    %182 = vector.extract_strided_slice %21 {offsets = [8, 0], sizes = [2, 128], strides = [1, 1]} : vector<16x128xf32> to vector<2x128xf32>
    %cst_25 = arith.constant dense<0.000000e+00> : vector<2x128xf32>
    %183 = tpu.matmul %161, %3, %cst_25 {dimension_numbers = #tpu.dot_dimension_numbers<[1], [0], [0], [1], [0, 0, 1, 1], [], []>} : vector<2x32xf32>, vector<32x128xf32>, vector<2x128xf32> -> vector<2x128xf32>
    %184 = arith.addf %182, %183 : vector<2x128xf32>
    %185 = vector.extract_strided_slice %184 {offsets = [0, 0], sizes = [2, 96], strides = [1, 1]} : vector<2x128xf32> to vector<2x96xf32>
    %186 = arith.negf %185 : vector<2x96xf32>
    %187 = math.exp %186 : vector<2x96xf32>
    %cst_26 = arith.constant 1.000000e+00 : f32
    %188 = vector.broadcast %cst_26 : f32 to vector<2x96xf32>
    %189 = arith.addf %188, %187 : vector<2x96xf32>
    %190 = arith.divf %188, %189 : vector<2x96xf32>
    %191 = vector.extract_strided_slice %184 {offsets = [0, 96], sizes = [2, 32], strides = [1, 1]} : vector<2x128xf32> to vector<2x32xf32>
    %192 = math.tanh %191 : vector<2x32xf32>
    %193 = vector.extract_strided_slice %190 {offsets = [0, 0], sizes = [2, 32], strides = [1, 1]} : vector<2x96xf32> to vector<2x32xf32>
    %194 = vector.extract_strided_slice %190 {offsets = [0, 32], sizes = [2, 32], strides = [1, 1]} : vector<2x96xf32> to vector<2x32xf32>
    %195 = vector.extract_strided_slice %190 {offsets = [0, 64], sizes = [2, 32], strides = [1, 1]} : vector<2x96xf32> to vector<2x32xf32>
    %196 = arith.mulf %194, %159 : vector<2x32xf32>
    %197 = arith.mulf %193, %192 : vector<2x32xf32>
    %198 = arith.addf %196, %197 : vector<2x32xf32>
    %199 = math.tanh %198 : vector<2x32xf32>
    %200 = arith.mulf %195, %199 : vector<2x32xf32>
    %201 = tpu.concatenate %200, %181 in 1 : vector<2x32xf32>, vector<2x32xf32> -> vector<2x64xf32>
    %cst_27 = arith.constant dense<0.000000e+00> : vector<2x128xf32>
    %202 = tpu.matmul %201, %4, %cst_27 {dimension_numbers = #tpu.dot_dimension_numbers<[1], [0], [0], [1], [0, 0, 1, 1], [], []>} : vector<2x64xf32>, vector<64x128xf32>, vector<2x128xf32> -> vector<2x128xf32>
    %203 = vector.broadcast %9 : vector<1x128xf32> to vector<2x128xf32>
    %204 = arith.addf %202, %203 : vector<2x128xf32>
    %205 = vector.extract_strided_slice %204 {offsets = [0, 0], sizes = [2, 96], strides = [1, 1]} : vector<2x128xf32> to vector<2x96xf32>
    %206 = arith.negf %205 : vector<2x96xf32>
    %207 = math.exp %206 : vector<2x96xf32>
    %cst_28 = arith.constant 1.000000e+00 : f32
    %208 = vector.broadcast %cst_28 : f32 to vector<2x96xf32>
    %209 = arith.addf %208, %207 : vector<2x96xf32>
    %210 = arith.divf %208, %209 : vector<2x96xf32>
    %211 = vector.extract_strided_slice %204 {offsets = [0, 96], sizes = [2, 32], strides = [1, 1]} : vector<2x128xf32> to vector<2x32xf32>
    %212 = math.tanh %211 : vector<2x32xf32>
    %213 = vector.extract_strided_slice %210 {offsets = [0, 0], sizes = [2, 32], strides = [1, 1]} : vector<2x96xf32> to vector<2x32xf32>
    %214 = vector.extract_strided_slice %210 {offsets = [0, 32], sizes = [2, 32], strides = [1, 1]} : vector<2x96xf32> to vector<2x32xf32>
    %215 = vector.extract_strided_slice %210 {offsets = [0, 64], sizes = [2, 32], strides = [1, 1]} : vector<2x96xf32> to vector<2x32xf32>
    %216 = arith.mulf %214, %179 : vector<2x32xf32>
    %217 = arith.mulf %213, %212 : vector<2x32xf32>
    %218 = arith.addf %216, %217 : vector<2x32xf32>
    %219 = math.tanh %218 : vector<2x32xf32>
    %220 = arith.mulf %215, %219 : vector<2x32xf32>
    %221 = vector.extract_strided_slice %21 {offsets = [10, 0], sizes = [2, 128], strides = [1, 1]} : vector<16x128xf32> to vector<2x128xf32>
    %cst_29 = arith.constant dense<0.000000e+00> : vector<2x128xf32>
    %222 = tpu.matmul %200, %3, %cst_29 {dimension_numbers = #tpu.dot_dimension_numbers<[1], [0], [0], [1], [0, 0, 1, 1], [], []>} : vector<2x32xf32>, vector<32x128xf32>, vector<2x128xf32> -> vector<2x128xf32>
    %223 = arith.addf %221, %222 : vector<2x128xf32>
    %224 = vector.extract_strided_slice %223 {offsets = [0, 0], sizes = [2, 96], strides = [1, 1]} : vector<2x128xf32> to vector<2x96xf32>
    %225 = arith.negf %224 : vector<2x96xf32>
    %226 = math.exp %225 : vector<2x96xf32>
    %cst_30 = arith.constant 1.000000e+00 : f32
    %227 = vector.broadcast %cst_30 : f32 to vector<2x96xf32>
    %228 = arith.addf %227, %226 : vector<2x96xf32>
    %229 = arith.divf %227, %228 : vector<2x96xf32>
    %230 = vector.extract_strided_slice %223 {offsets = [0, 96], sizes = [2, 32], strides = [1, 1]} : vector<2x128xf32> to vector<2x32xf32>
    %231 = math.tanh %230 : vector<2x32xf32>
    %232 = vector.extract_strided_slice %229 {offsets = [0, 0], sizes = [2, 32], strides = [1, 1]} : vector<2x96xf32> to vector<2x32xf32>
    %233 = vector.extract_strided_slice %229 {offsets = [0, 32], sizes = [2, 32], strides = [1, 1]} : vector<2x96xf32> to vector<2x32xf32>
    %234 = vector.extract_strided_slice %229 {offsets = [0, 64], sizes = [2, 32], strides = [1, 1]} : vector<2x96xf32> to vector<2x32xf32>
    %235 = arith.mulf %233, %198 : vector<2x32xf32>
    %236 = arith.mulf %232, %231 : vector<2x32xf32>
    %237 = arith.addf %235, %236 : vector<2x32xf32>
    %238 = math.tanh %237 : vector<2x32xf32>
    %239 = arith.mulf %234, %238 : vector<2x32xf32>
    %240 = tpu.concatenate %239, %220 in 1 : vector<2x32xf32>, vector<2x32xf32> -> vector<2x64xf32>
    %cst_31 = arith.constant dense<0.000000e+00> : vector<2x128xf32>
    %241 = tpu.matmul %240, %4, %cst_31 {dimension_numbers = #tpu.dot_dimension_numbers<[1], [0], [0], [1], [0, 0, 1, 1], [], []>} : vector<2x64xf32>, vector<64x128xf32>, vector<2x128xf32> -> vector<2x128xf32>
    %242 = vector.broadcast %9 : vector<1x128xf32> to vector<2x128xf32>
    %243 = arith.addf %241, %242 : vector<2x128xf32>
    %244 = vector.extract_strided_slice %243 {offsets = [0, 0], sizes = [2, 96], strides = [1, 1]} : vector<2x128xf32> to vector<2x96xf32>
    %245 = arith.negf %244 : vector<2x96xf32>
    %246 = math.exp %245 : vector<2x96xf32>
    %cst_32 = arith.constant 1.000000e+00 : f32
    %247 = vector.broadcast %cst_32 : f32 to vector<2x96xf32>
    %248 = arith.addf %247, %246 : vector<2x96xf32>
    %249 = arith.divf %247, %248 : vector<2x96xf32>
    %250 = vector.extract_strided_slice %243 {offsets = [0, 96], sizes = [2, 32], strides = [1, 1]} : vector<2x128xf32> to vector<2x32xf32>
    %251 = math.tanh %250 : vector<2x32xf32>
    %252 = vector.extract_strided_slice %249 {offsets = [0, 0], sizes = [2, 32], strides = [1, 1]} : vector<2x96xf32> to vector<2x32xf32>
    %253 = vector.extract_strided_slice %249 {offsets = [0, 32], sizes = [2, 32], strides = [1, 1]} : vector<2x96xf32> to vector<2x32xf32>
    %254 = vector.extract_strided_slice %249 {offsets = [0, 64], sizes = [2, 32], strides = [1, 1]} : vector<2x96xf32> to vector<2x32xf32>
    %255 = arith.mulf %253, %218 : vector<2x32xf32>
    %256 = arith.mulf %252, %251 : vector<2x32xf32>
    %257 = arith.addf %255, %256 : vector<2x32xf32>
    %258 = math.tanh %257 : vector<2x32xf32>
    %259 = arith.mulf %254, %258 : vector<2x32xf32>
    %260 = vector.extract_strided_slice %21 {offsets = [12, 0], sizes = [2, 128], strides = [1, 1]} : vector<16x128xf32> to vector<2x128xf32>
    %cst_33 = arith.constant dense<0.000000e+00> : vector<2x128xf32>
    %261 = tpu.matmul %239, %3, %cst_33 {dimension_numbers = #tpu.dot_dimension_numbers<[1], [0], [0], [1], [0, 0, 1, 1], [], []>} : vector<2x32xf32>, vector<32x128xf32>, vector<2x128xf32> -> vector<2x128xf32>
    %262 = arith.addf %260, %261 : vector<2x128xf32>
    %263 = vector.extract_strided_slice %262 {offsets = [0, 0], sizes = [2, 96], strides = [1, 1]} : vector<2x128xf32> to vector<2x96xf32>
    %264 = arith.negf %263 : vector<2x96xf32>
    %265 = math.exp %264 : vector<2x96xf32>
    %cst_34 = arith.constant 1.000000e+00 : f32
    %266 = vector.broadcast %cst_34 : f32 to vector<2x96xf32>
    %267 = arith.addf %266, %265 : vector<2x96xf32>
    %268 = arith.divf %266, %267 : vector<2x96xf32>
    %269 = vector.extract_strided_slice %262 {offsets = [0, 96], sizes = [2, 32], strides = [1, 1]} : vector<2x128xf32> to vector<2x32xf32>
    %270 = math.tanh %269 : vector<2x32xf32>
    %271 = vector.extract_strided_slice %268 {offsets = [0, 0], sizes = [2, 32], strides = [1, 1]} : vector<2x96xf32> to vector<2x32xf32>
    %272 = vector.extract_strided_slice %268 {offsets = [0, 32], sizes = [2, 32], strides = [1, 1]} : vector<2x96xf32> to vector<2x32xf32>
    %273 = vector.extract_strided_slice %268 {offsets = [0, 64], sizes = [2, 32], strides = [1, 1]} : vector<2x96xf32> to vector<2x32xf32>
    %274 = arith.mulf %272, %237 : vector<2x32xf32>
    %275 = arith.mulf %271, %270 : vector<2x32xf32>
    %276 = arith.addf %274, %275 : vector<2x32xf32>
    %277 = math.tanh %276 : vector<2x32xf32>
    %278 = arith.mulf %273, %277 : vector<2x32xf32>
    %279 = tpu.concatenate %278, %259 in 1 : vector<2x32xf32>, vector<2x32xf32> -> vector<2x64xf32>
    %cst_35 = arith.constant dense<0.000000e+00> : vector<2x128xf32>
    %280 = tpu.matmul %279, %4, %cst_35 {dimension_numbers = #tpu.dot_dimension_numbers<[1], [0], [0], [1], [0, 0, 1, 1], [], []>} : vector<2x64xf32>, vector<64x128xf32>, vector<2x128xf32> -> vector<2x128xf32>
    %281 = vector.broadcast %9 : vector<1x128xf32> to vector<2x128xf32>
    %282 = arith.addf %280, %281 : vector<2x128xf32>
    %283 = vector.extract_strided_slice %282 {offsets = [0, 0], sizes = [2, 96], strides = [1, 1]} : vector<2x128xf32> to vector<2x96xf32>
    %284 = arith.negf %283 : vector<2x96xf32>
    %285 = math.exp %284 : vector<2x96xf32>
    %cst_36 = arith.constant 1.000000e+00 : f32
    %286 = vector.broadcast %cst_36 : f32 to vector<2x96xf32>
    %287 = arith.addf %286, %285 : vector<2x96xf32>
    %288 = arith.divf %286, %287 : vector<2x96xf32>
    %289 = vector.extract_strided_slice %282 {offsets = [0, 96], sizes = [2, 32], strides = [1, 1]} : vector<2x128xf32> to vector<2x32xf32>
    %290 = math.tanh %289 : vector<2x32xf32>
    %291 = vector.extract_strided_slice %288 {offsets = [0, 0], sizes = [2, 32], strides = [1, 1]} : vector<2x96xf32> to vector<2x32xf32>
    %292 = vector.extract_strided_slice %288 {offsets = [0, 32], sizes = [2, 32], strides = [1, 1]} : vector<2x96xf32> to vector<2x32xf32>
    %293 = vector.extract_strided_slice %288 {offsets = [0, 64], sizes = [2, 32], strides = [1, 1]} : vector<2x96xf32> to vector<2x32xf32>
    %294 = arith.mulf %292, %257 : vector<2x32xf32>
    %295 = arith.mulf %291, %290 : vector<2x32xf32>
    %296 = arith.addf %294, %295 : vector<2x32xf32>
    %297 = math.tanh %296 : vector<2x32xf32>
    %298 = arith.mulf %293, %297 : vector<2x32xf32>
    %299 = vector.extract_strided_slice %21 {offsets = [14, 0], sizes = [2, 128], strides = [1, 1]} : vector<16x128xf32> to vector<2x128xf32>
    %cst_37 = arith.constant dense<0.000000e+00> : vector<2x128xf32>
    %300 = tpu.matmul %278, %3, %cst_37 {dimension_numbers = #tpu.dot_dimension_numbers<[1], [0], [0], [1], [0, 0, 1, 1], [], []>} : vector<2x32xf32>, vector<32x128xf32>, vector<2x128xf32> -> vector<2x128xf32>
    %301 = arith.addf %299, %300 : vector<2x128xf32>
    %302 = vector.extract_strided_slice %301 {offsets = [0, 0], sizes = [2, 96], strides = [1, 1]} : vector<2x128xf32> to vector<2x96xf32>
    %303 = arith.negf %302 : vector<2x96xf32>
    %304 = math.exp %303 : vector<2x96xf32>
    %cst_38 = arith.constant 1.000000e+00 : f32
    %305 = vector.broadcast %cst_38 : f32 to vector<2x96xf32>
    %306 = arith.addf %305, %304 : vector<2x96xf32>
    %307 = arith.divf %305, %306 : vector<2x96xf32>
    %308 = vector.extract_strided_slice %301 {offsets = [0, 96], sizes = [2, 32], strides = [1, 1]} : vector<2x128xf32> to vector<2x32xf32>
    %309 = math.tanh %308 : vector<2x32xf32>
    %310 = vector.extract_strided_slice %307 {offsets = [0, 0], sizes = [2, 32], strides = [1, 1]} : vector<2x96xf32> to vector<2x32xf32>
    %311 = vector.extract_strided_slice %307 {offsets = [0, 32], sizes = [2, 32], strides = [1, 1]} : vector<2x96xf32> to vector<2x32xf32>
    %312 = vector.extract_strided_slice %307 {offsets = [0, 64], sizes = [2, 32], strides = [1, 1]} : vector<2x96xf32> to vector<2x32xf32>
    %313 = arith.mulf %311, %276 : vector<2x32xf32>
    %314 = arith.mulf %310, %309 : vector<2x32xf32>
    %315 = arith.addf %313, %314 : vector<2x32xf32>
    %316 = math.tanh %315 : vector<2x32xf32>
    %317 = arith.mulf %312, %316 : vector<2x32xf32>
    %318 = tpu.concatenate %317, %298 in 1 : vector<2x32xf32>, vector<2x32xf32> -> vector<2x64xf32>
    %cst_39 = arith.constant dense<0.000000e+00> : vector<2x128xf32>
    %319 = tpu.matmul %318, %4, %cst_39 {dimension_numbers = #tpu.dot_dimension_numbers<[1], [0], [0], [1], [0, 0, 1, 1], [], []>} : vector<2x64xf32>, vector<64x128xf32>, vector<2x128xf32> -> vector<2x128xf32>
    %320 = vector.broadcast %9 : vector<1x128xf32> to vector<2x128xf32>
    %321 = arith.addf %319, %320 : vector<2x128xf32>
    %322 = vector.extract_strided_slice %321 {offsets = [0, 0], sizes = [2, 96], strides = [1, 1]} : vector<2x128xf32> to vector<2x96xf32>
    %323 = arith.negf %322 : vector<2x96xf32>
    %324 = math.exp %323 : vector<2x96xf32>
    %cst_40 = arith.constant 1.000000e+00 : f32
    %325 = vector.broadcast %cst_40 : f32 to vector<2x96xf32>
    %326 = arith.addf %325, %324 : vector<2x96xf32>
    %327 = arith.divf %325, %326 : vector<2x96xf32>
    %328 = vector.extract_strided_slice %321 {offsets = [0, 96], sizes = [2, 32], strides = [1, 1]} : vector<2x128xf32> to vector<2x32xf32>
    %329 = math.tanh %328 : vector<2x32xf32>
    %330 = vector.extract_strided_slice %327 {offsets = [0, 0], sizes = [2, 32], strides = [1, 1]} : vector<2x96xf32> to vector<2x32xf32>
    %331 = vector.extract_strided_slice %327 {offsets = [0, 32], sizes = [2, 32], strides = [1, 1]} : vector<2x96xf32> to vector<2x32xf32>
    %332 = vector.extract_strided_slice %327 {offsets = [0, 64], sizes = [2, 32], strides = [1, 1]} : vector<2x96xf32> to vector<2x32xf32>
    %333 = arith.mulf %331, %296 : vector<2x32xf32>
    %334 = arith.mulf %330, %329 : vector<2x32xf32>
    %335 = arith.addf %333, %334 : vector<2x32xf32>
    %336 = math.tanh %335 : vector<2x32xf32>
    %337 = arith.mulf %332, %336 : vector<2x32xf32>
    %338 = vector.extract_strided_slice %18 {offsets = [14, 0], sizes = [2, 1], strides = [1, 1]} : vector<16x4xf32> to vector<2x1xf32>
    %339 = vector.broadcast %338 : vector<2x1xf32> to vector<2x4xf32>
    %340 = vector.broadcast %14 : vector<1x4xf32> to vector<2x4xf32>
    %341 = arith.mulf %339, %340 : vector<2x4xf32>
    %342 = vector.broadcast %15 : vector<1x4xf32> to vector<2x4xf32>
    %343 = arith.addf %341, %342 : vector<2x4xf32>
    %344 = tpu.concatenate %343, %317 in 1 : vector<2x4xf32>, vector<2x32xf32> -> vector<2x36xf32>
    %cst_41 = arith.constant dense<0.000000e+00> : vector<2x128xf32>
    %345 = tpu.matmul %344, %5, %cst_41 {dimension_numbers = #tpu.dot_dimension_numbers<[1], [0], [0], [1], [0, 0, 1, 1], [], []>} : vector<2x36xf32>, vector<36x128xf32>, vector<2x128xf32> -> vector<2x128xf32>
    %346 = vector.broadcast %10 : vector<1x128xf32> to vector<2x128xf32>
    %347 = arith.addf %345, %346 : vector<2x128xf32>
    %348 = vector.extract_strided_slice %347 {offsets = [0, 0], sizes = [2, 96], strides = [1, 1]} : vector<2x128xf32> to vector<2x96xf32>
    %349 = arith.negf %348 : vector<2x96xf32>
    %350 = math.exp %349 : vector<2x96xf32>
    %cst_42 = arith.constant 1.000000e+00 : f32
    %351 = vector.broadcast %cst_42 : f32 to vector<2x96xf32>
    %352 = arith.addf %351, %350 : vector<2x96xf32>
    %353 = arith.divf %351, %352 : vector<2x96xf32>
    %354 = vector.extract_strided_slice %347 {offsets = [0, 96], sizes = [2, 32], strides = [1, 1]} : vector<2x128xf32> to vector<2x32xf32>
    %355 = math.tanh %354 : vector<2x32xf32>
    %356 = vector.extract_strided_slice %353 {offsets = [0, 0], sizes = [2, 32], strides = [1, 1]} : vector<2x96xf32> to vector<2x32xf32>
    %357 = vector.extract_strided_slice %353 {offsets = [0, 32], sizes = [2, 32], strides = [1, 1]} : vector<2x96xf32> to vector<2x32xf32>
    %358 = vector.extract_strided_slice %353 {offsets = [0, 64], sizes = [2, 32], strides = [1, 1]} : vector<2x96xf32> to vector<2x32xf32>
    %359 = arith.mulf %357, %315 : vector<2x32xf32>
    %360 = arith.mulf %356, %355 : vector<2x32xf32>
    %361 = arith.addf %359, %360 : vector<2x32xf32>
    %362 = math.tanh %361 : vector<2x32xf32>
    %363 = arith.mulf %358, %362 : vector<2x32xf32>
    %364 = tpu.concatenate %363, %337 in 1 : vector<2x32xf32>, vector<2x32xf32> -> vector<2x64xf32>
    %cst_43 = arith.constant dense<0.000000e+00> : vector<2x128xf32>
    %365 = tpu.matmul %364, %7, %cst_43 {dimension_numbers = #tpu.dot_dimension_numbers<[1], [0], [0], [1], [0, 0, 1, 1], [], []>} : vector<2x64xf32>, vector<64x128xf32>, vector<2x128xf32> -> vector<2x128xf32>
    %366 = vector.broadcast %12 : vector<1x128xf32> to vector<2x128xf32>
    %367 = arith.addf %365, %366 : vector<2x128xf32>
    %368 = vector.extract_strided_slice %367 {offsets = [0, 0], sizes = [2, 96], strides = [1, 1]} : vector<2x128xf32> to vector<2x96xf32>
    %369 = arith.negf %368 : vector<2x96xf32>
    %370 = math.exp %369 : vector<2x96xf32>
    %cst_44 = arith.constant 1.000000e+00 : f32
    %371 = vector.broadcast %cst_44 : f32 to vector<2x96xf32>
    %372 = arith.addf %371, %370 : vector<2x96xf32>
    %373 = arith.divf %371, %372 : vector<2x96xf32>
    %374 = vector.extract_strided_slice %367 {offsets = [0, 96], sizes = [2, 32], strides = [1, 1]} : vector<2x128xf32> to vector<2x32xf32>
    %375 = math.tanh %374 : vector<2x32xf32>
    %376 = vector.extract_strided_slice %373 {offsets = [0, 0], sizes = [2, 32], strides = [1, 1]} : vector<2x96xf32> to vector<2x32xf32>
    %377 = vector.extract_strided_slice %373 {offsets = [0, 32], sizes = [2, 32], strides = [1, 1]} : vector<2x96xf32> to vector<2x32xf32>
    %378 = vector.extract_strided_slice %373 {offsets = [0, 64], sizes = [2, 32], strides = [1, 1]} : vector<2x96xf32> to vector<2x32xf32>
    %379 = arith.mulf %377, %335 : vector<2x32xf32>
    %380 = arith.mulf %376, %375 : vector<2x32xf32>
    %381 = arith.addf %379, %380 : vector<2x32xf32>
    %382 = math.tanh %381 : vector<2x32xf32>
    %383 = arith.mulf %378, %382 : vector<2x32xf32>
    %384 = vector.broadcast %16 : vector<1x32xf32> to vector<2x32xf32>
    %385 = arith.mulf %383, %384 : vector<2x32xf32>
    %cst_45 = arith.constant dense<0.000000e+00> : vector<2xf32>
    %386 = vector.multi_reduction <add>, %385, %cst_45 [1] : vector<2x32xf32> to vector<2xf32>
    %387 = vector.shape_cast %386 : vector<2xf32> to vector<2x1xf32>
    %388 = vector.broadcast %17 : vector<1x1xf32> to vector<2x1xf32>
    %389 = arith.addf %387, %388 : vector<2x1xf32>
    %390 = tpu.concatenate %383, %363 in 1 : vector<2x32xf32>, vector<2x32xf32> -> vector<2x64xf32>
    %cst_46 = arith.constant dense<0.000000e+00> : vector<2x128xf32>
    %391 = tpu.matmul %390, %6, %cst_46 {dimension_numbers = #tpu.dot_dimension_numbers<[1], [0], [0], [1], [0, 0, 1, 1], [], []>} : vector<2x64xf32>, vector<64x128xf32>, vector<2x128xf32> -> vector<2x128xf32>
    %392 = vector.broadcast %11 : vector<1x128xf32> to vector<2x128xf32>
    %393 = arith.addf %391, %392 : vector<2x128xf32>
    %394 = vector.extract_strided_slice %393 {offsets = [0, 0], sizes = [2, 96], strides = [1, 1]} : vector<2x128xf32> to vector<2x96xf32>
    %395 = arith.negf %394 : vector<2x96xf32>
    %396 = math.exp %395 : vector<2x96xf32>
    %cst_47 = arith.constant 1.000000e+00 : f32
    %397 = vector.broadcast %cst_47 : f32 to vector<2x96xf32>
    %398 = arith.addf %397, %396 : vector<2x96xf32>
    %399 = arith.divf %397, %398 : vector<2x96xf32>
    %400 = vector.extract_strided_slice %393 {offsets = [0, 96], sizes = [2, 32], strides = [1, 1]} : vector<2x128xf32> to vector<2x32xf32>
    %401 = math.tanh %400 : vector<2x32xf32>
    %402 = vector.extract_strided_slice %399 {offsets = [0, 0], sizes = [2, 32], strides = [1, 1]} : vector<2x96xf32> to vector<2x32xf32>
    %403 = vector.extract_strided_slice %399 {offsets = [0, 32], sizes = [2, 32], strides = [1, 1]} : vector<2x96xf32> to vector<2x32xf32>
    %404 = vector.extract_strided_slice %399 {offsets = [0, 64], sizes = [2, 32], strides = [1, 1]} : vector<2x96xf32> to vector<2x32xf32>
    %405 = arith.mulf %403, %361 : vector<2x32xf32>
    %406 = arith.mulf %402, %401 : vector<2x32xf32>
    %407 = arith.addf %405, %406 : vector<2x32xf32>
    %408 = math.tanh %407 : vector<2x32xf32>
    %409 = arith.mulf %404, %408 : vector<2x32xf32>
    %410 = tpu.concatenate %409, %383 in 1 : vector<2x32xf32>, vector<2x32xf32> -> vector<2x64xf32>
    %cst_48 = arith.constant dense<0.000000e+00> : vector<2x128xf32>
    %411 = tpu.matmul %410, %7, %cst_48 {dimension_numbers = #tpu.dot_dimension_numbers<[1], [0], [0], [1], [0, 0, 1, 1], [], []>} : vector<2x64xf32>, vector<64x128xf32>, vector<2x128xf32> -> vector<2x128xf32>
    %412 = vector.broadcast %12 : vector<1x128xf32> to vector<2x128xf32>
    %413 = arith.addf %411, %412 : vector<2x128xf32>
    %414 = vector.extract_strided_slice %413 {offsets = [0, 0], sizes = [2, 96], strides = [1, 1]} : vector<2x128xf32> to vector<2x96xf32>
    %415 = arith.negf %414 : vector<2x96xf32>
    %416 = math.exp %415 : vector<2x96xf32>
    %cst_49 = arith.constant 1.000000e+00 : f32
    %417 = vector.broadcast %cst_49 : f32 to vector<2x96xf32>
    %418 = arith.addf %417, %416 : vector<2x96xf32>
    %419 = arith.divf %417, %418 : vector<2x96xf32>
    %420 = vector.extract_strided_slice %413 {offsets = [0, 96], sizes = [2, 32], strides = [1, 1]} : vector<2x128xf32> to vector<2x32xf32>
    %421 = math.tanh %420 : vector<2x32xf32>
    %422 = vector.extract_strided_slice %419 {offsets = [0, 0], sizes = [2, 32], strides = [1, 1]} : vector<2x96xf32> to vector<2x32xf32>
    %423 = vector.extract_strided_slice %419 {offsets = [0, 32], sizes = [2, 32], strides = [1, 1]} : vector<2x96xf32> to vector<2x32xf32>
    %424 = vector.extract_strided_slice %419 {offsets = [0, 64], sizes = [2, 32], strides = [1, 1]} : vector<2x96xf32> to vector<2x32xf32>
    %425 = arith.mulf %423, %381 : vector<2x32xf32>
    %426 = arith.mulf %422, %421 : vector<2x32xf32>
    %427 = arith.addf %425, %426 : vector<2x32xf32>
    %428 = math.tanh %427 : vector<2x32xf32>
    %429 = arith.mulf %424, %428 : vector<2x32xf32>
    %430 = vector.broadcast %16 : vector<1x32xf32> to vector<2x32xf32>
    %431 = arith.mulf %429, %430 : vector<2x32xf32>
    %cst_50 = arith.constant dense<0.000000e+00> : vector<2xf32>
    %432 = vector.multi_reduction <add>, %431, %cst_50 [1] : vector<2x32xf32> to vector<2xf32>
    %433 = vector.shape_cast %432 : vector<2xf32> to vector<2x1xf32>
    %434 = vector.broadcast %17 : vector<1x1xf32> to vector<2x1xf32>
    %435 = arith.addf %433, %434 : vector<2x1xf32>
    %436 = tpu.concatenate %429, %409 in 1 : vector<2x32xf32>, vector<2x32xf32> -> vector<2x64xf32>
    %cst_51 = arith.constant dense<0.000000e+00> : vector<2x128xf32>
    %437 = tpu.matmul %436, %6, %cst_51 {dimension_numbers = #tpu.dot_dimension_numbers<[1], [0], [0], [1], [0, 0, 1, 1], [], []>} : vector<2x64xf32>, vector<64x128xf32>, vector<2x128xf32> -> vector<2x128xf32>
    %438 = vector.broadcast %11 : vector<1x128xf32> to vector<2x128xf32>
    %439 = arith.addf %437, %438 : vector<2x128xf32>
    %440 = vector.extract_strided_slice %439 {offsets = [0, 0], sizes = [2, 96], strides = [1, 1]} : vector<2x128xf32> to vector<2x96xf32>
    %441 = arith.negf %440 : vector<2x96xf32>
    %442 = math.exp %441 : vector<2x96xf32>
    %cst_52 = arith.constant 1.000000e+00 : f32
    %443 = vector.broadcast %cst_52 : f32 to vector<2x96xf32>
    %444 = arith.addf %443, %442 : vector<2x96xf32>
    %445 = arith.divf %443, %444 : vector<2x96xf32>
    %446 = vector.extract_strided_slice %439 {offsets = [0, 96], sizes = [2, 32], strides = [1, 1]} : vector<2x128xf32> to vector<2x32xf32>
    %447 = math.tanh %446 : vector<2x32xf32>
    %448 = vector.extract_strided_slice %445 {offsets = [0, 0], sizes = [2, 32], strides = [1, 1]} : vector<2x96xf32> to vector<2x32xf32>
    %449 = vector.extract_strided_slice %445 {offsets = [0, 32], sizes = [2, 32], strides = [1, 1]} : vector<2x96xf32> to vector<2x32xf32>
    %450 = vector.extract_strided_slice %445 {offsets = [0, 64], sizes = [2, 32], strides = [1, 1]} : vector<2x96xf32> to vector<2x32xf32>
    %451 = arith.mulf %449, %407 : vector<2x32xf32>
    %452 = arith.mulf %448, %447 : vector<2x32xf32>
    %453 = arith.addf %451, %452 : vector<2x32xf32>
    %454 = math.tanh %453 : vector<2x32xf32>
    %455 = arith.mulf %450, %454 : vector<2x32xf32>
    %456 = tpu.concatenate %455, %429 in 1 : vector<2x32xf32>, vector<2x32xf32> -> vector<2x64xf32>
    %cst_53 = arith.constant dense<0.000000e+00> : vector<2x128xf32>
    %457 = tpu.matmul %456, %7, %cst_53 {dimension_numbers = #tpu.dot_dimension_numbers<[1], [0], [0], [1], [0, 0, 1, 1], [], []>} : vector<2x64xf32>, vector<64x128xf32>, vector<2x128xf32> -> vector<2x128xf32>
    %458 = vector.broadcast %12 : vector<1x128xf32> to vector<2x128xf32>
    %459 = arith.addf %457, %458 : vector<2x128xf32>
    %460 = vector.extract_strided_slice %459 {offsets = [0, 0], sizes = [2, 96], strides = [1, 1]} : vector<2x128xf32> to vector<2x96xf32>
    %461 = arith.negf %460 : vector<2x96xf32>
    %462 = math.exp %461 : vector<2x96xf32>
    %cst_54 = arith.constant 1.000000e+00 : f32
    %463 = vector.broadcast %cst_54 : f32 to vector<2x96xf32>
    %464 = arith.addf %463, %462 : vector<2x96xf32>
    %465 = arith.divf %463, %464 : vector<2x96xf32>
    %466 = vector.extract_strided_slice %459 {offsets = [0, 96], sizes = [2, 32], strides = [1, 1]} : vector<2x128xf32> to vector<2x32xf32>
    %467 = math.tanh %466 : vector<2x32xf32>
    %468 = vector.extract_strided_slice %465 {offsets = [0, 0], sizes = [2, 32], strides = [1, 1]} : vector<2x96xf32> to vector<2x32xf32>
    %469 = vector.extract_strided_slice %465 {offsets = [0, 32], sizes = [2, 32], strides = [1, 1]} : vector<2x96xf32> to vector<2x32xf32>
    %470 = vector.extract_strided_slice %465 {offsets = [0, 64], sizes = [2, 32], strides = [1, 1]} : vector<2x96xf32> to vector<2x32xf32>
    %471 = arith.mulf %469, %427 : vector<2x32xf32>
    %472 = arith.mulf %468, %467 : vector<2x32xf32>
    %473 = arith.addf %471, %472 : vector<2x32xf32>
    %474 = math.tanh %473 : vector<2x32xf32>
    %475 = arith.mulf %470, %474 : vector<2x32xf32>
    %476 = vector.broadcast %16 : vector<1x32xf32> to vector<2x32xf32>
    %477 = arith.mulf %475, %476 : vector<2x32xf32>
    %cst_55 = arith.constant dense<0.000000e+00> : vector<2xf32>
    %478 = vector.multi_reduction <add>, %477, %cst_55 [1] : vector<2x32xf32> to vector<2xf32>
    %479 = vector.shape_cast %478 : vector<2xf32> to vector<2x1xf32>
    %480 = vector.broadcast %17 : vector<1x1xf32> to vector<2x1xf32>
    %481 = arith.addf %479, %480 : vector<2x1xf32>
    %482 = tpu.concatenate %475, %455 in 1 : vector<2x32xf32>, vector<2x32xf32> -> vector<2x64xf32>
    %cst_56 = arith.constant dense<0.000000e+00> : vector<2x128xf32>
    %483 = tpu.matmul %482, %6, %cst_56 {dimension_numbers = #tpu.dot_dimension_numbers<[1], [0], [0], [1], [0, 0, 1, 1], [], []>} : vector<2x64xf32>, vector<64x128xf32>, vector<2x128xf32> -> vector<2x128xf32>
    %484 = vector.broadcast %11 : vector<1x128xf32> to vector<2x128xf32>
    %485 = arith.addf %483, %484 : vector<2x128xf32>
    %486 = vector.extract_strided_slice %485 {offsets = [0, 0], sizes = [2, 96], strides = [1, 1]} : vector<2x128xf32> to vector<2x96xf32>
    %487 = arith.negf %486 : vector<2x96xf32>
    %488 = math.exp %487 : vector<2x96xf32>
    %cst_57 = arith.constant 1.000000e+00 : f32
    %489 = vector.broadcast %cst_57 : f32 to vector<2x96xf32>
    %490 = arith.addf %489, %488 : vector<2x96xf32>
    %491 = arith.divf %489, %490 : vector<2x96xf32>
    %492 = vector.extract_strided_slice %485 {offsets = [0, 96], sizes = [2, 32], strides = [1, 1]} : vector<2x128xf32> to vector<2x32xf32>
    %493 = math.tanh %492 : vector<2x32xf32>
    %494 = vector.extract_strided_slice %491 {offsets = [0, 0], sizes = [2, 32], strides = [1, 1]} : vector<2x96xf32> to vector<2x32xf32>
    %495 = vector.extract_strided_slice %491 {offsets = [0, 32], sizes = [2, 32], strides = [1, 1]} : vector<2x96xf32> to vector<2x32xf32>
    %496 = vector.extract_strided_slice %491 {offsets = [0, 64], sizes = [2, 32], strides = [1, 1]} : vector<2x96xf32> to vector<2x32xf32>
    %497 = arith.mulf %495, %453 : vector<2x32xf32>
    %498 = arith.mulf %494, %493 : vector<2x32xf32>
    %499 = arith.addf %497, %498 : vector<2x32xf32>
    %500 = math.tanh %499 : vector<2x32xf32>
    %501 = arith.mulf %496, %500 : vector<2x32xf32>
    %502 = tpu.concatenate %501, %475 in 1 : vector<2x32xf32>, vector<2x32xf32> -> vector<2x64xf32>
    %cst_58 = arith.constant dense<0.000000e+00> : vector<2x128xf32>
    %503 = tpu.matmul %502, %7, %cst_58 {dimension_numbers = #tpu.dot_dimension_numbers<[1], [0], [0], [1], [0, 0, 1, 1], [], []>} : vector<2x64xf32>, vector<64x128xf32>, vector<2x128xf32> -> vector<2x128xf32>
    %504 = vector.broadcast %12 : vector<1x128xf32> to vector<2x128xf32>
    %505 = arith.addf %503, %504 : vector<2x128xf32>
    %506 = vector.extract_strided_slice %505 {offsets = [0, 0], sizes = [2, 96], strides = [1, 1]} : vector<2x128xf32> to vector<2x96xf32>
    %507 = arith.negf %506 : vector<2x96xf32>
    %508 = math.exp %507 : vector<2x96xf32>
    %cst_59 = arith.constant 1.000000e+00 : f32
    %509 = vector.broadcast %cst_59 : f32 to vector<2x96xf32>
    %510 = arith.addf %509, %508 : vector<2x96xf32>
    %511 = arith.divf %509, %510 : vector<2x96xf32>
    %512 = vector.extract_strided_slice %505 {offsets = [0, 96], sizes = [2, 32], strides = [1, 1]} : vector<2x128xf32> to vector<2x32xf32>
    %513 = math.tanh %512 : vector<2x32xf32>
    %514 = vector.extract_strided_slice %511 {offsets = [0, 0], sizes = [2, 32], strides = [1, 1]} : vector<2x96xf32> to vector<2x32xf32>
    %515 = vector.extract_strided_slice %511 {offsets = [0, 32], sizes = [2, 32], strides = [1, 1]} : vector<2x96xf32> to vector<2x32xf32>
    %516 = vector.extract_strided_slice %511 {offsets = [0, 64], sizes = [2, 32], strides = [1, 1]} : vector<2x96xf32> to vector<2x32xf32>
    %517 = arith.mulf %515, %473 : vector<2x32xf32>
    %518 = arith.mulf %514, %513 : vector<2x32xf32>
    %519 = arith.addf %517, %518 : vector<2x32xf32>
    %520 = math.tanh %519 : vector<2x32xf32>
    %521 = arith.mulf %516, %520 : vector<2x32xf32>
    %522 = vector.broadcast %16 : vector<1x32xf32> to vector<2x32xf32>
    %523 = arith.mulf %521, %522 : vector<2x32xf32>
    %cst_60 = arith.constant dense<0.000000e+00> : vector<2xf32>
    %524 = vector.multi_reduction <add>, %523, %cst_60 [1] : vector<2x32xf32> to vector<2xf32>
    %525 = vector.shape_cast %524 : vector<2xf32> to vector<2x1xf32>
    %526 = vector.broadcast %17 : vector<1x1xf32> to vector<2x1xf32>
    %527 = arith.addf %525, %526 : vector<2x1xf32>
    %528 = tpu.concatenate %389, %435, %481, %527 in 1 : vector<2x1xf32>, vector<2x1xf32>, vector<2x1xf32>, vector<2x1xf32> -> vector<2x4xf32>
    %c0_61 = arith.constant 0 : index
    %c0_62 = arith.constant 0 : index
    %529 = vector.load %arg3[%c0_61, %c0_62] : memref<2x4xf32, #tpu.memory_space<vmem>>, vector<2x4xf32>
    tpu.vector_store %arg3[%c0_61, %c0_62], %528 {strides = array<i32>} : memref<2x4xf32, #tpu.memory_space<vmem>>, vector<2x4xf32>,
    return
  }
}

</mosaic_0001>

<bundles_post_ra>
// kernel: tpu_custom_call.1
= control target key start
LH: loop header
LB: loop body
LE: loop exit
PB: predicated region body
PF: predicated region fallthrough
CT: control target
= control target key end

     0   :  { %8 = vsyncpa [#allocation3], 0  ;;  %s2659_s0 = inlined_call_operand.vmem [shape: f32[16,4], index: 0, kind: input, shape index: {}]   ;;  %s2660_s1 = inlined_call_operand.hbm [shape: f32[272,128], index: 1, kind: input, shape index: {}]   ;;  %s2661_s2 = inlined_call_operand.vmem [shape: f32[6,128], index: 2, kind: input, shape index: {}]   ;;  %s2662_s3 = inlined_call_operand.hbm [shape: f32[2,4], index: 3, kind: output, shape index: {}]  }
   0x1   :  { %9 = vsyncpa [#allocation4], 0  ;;  %s16_s14 = sshll.u32 %s2660_s1, 4  ;;  %s2160_s15 = smov [#allocation2]   ;;  %s17_s14 = int_to_ptr.hbm [resolvable:$true] %s16_s14 }
   0x2   :  { %s18_s16 = sshll.u32 %s2160_s15, 4  ;;  %s2161_s17 = smov 128   ;;  %s19_s16 = int_to_ptr.vmem [resolvable:$true] %s18_s16 }
   0x3   :  { %s2162_s18 = smov 8  }
   0x4   :  { %24 = dma.hbm_to_vmem [thread:$0]  %s17_s14, 4352, %s19_s16, [#allocation3], %s2161_s17, %s2161_s17, %s2162_s18  }
   0x5   :  { %2156 = dma.done.wait [#allocation3], 4352  }
   0x6   :  { %2157 = vsyncadd [#allocation3], 4294962944  ;;  %vm76_vm0 = vcmask 1043456   ;;  %vm69_vm1 = vcmask 31744   ;;  %v2199_v0 = vld [vmem:[#allocation2 + $0x20] sm:$0xff]  ;;  %v2201_v1 = vld [vmem:[#allocation2 + $0x18] sm:$0xff] }
   0x7   :  { %v31_v2 = vld [vmem:[#allocation2] sm:$0xff]  ;;  %119 = vmatpush.msra.mxu1 %v2199_v0  ;;  %v2208_v4 = vld [vmem:[#allocation2 + $0x10] sm:$0xff]  ;;  %246 = vmatpush.msra.mxu3 %v2199_v0  ;;  %v2213_v5 = vld [vmem:[#allocation2 + $0x8] sm:$0xff]  ;;  %v2163_v6 = vmov 0.0   ;;  %s2164_s22 = smov 32   ;;  %s2165_s23 = smov 64  }
   0x8   :  { %1845 = vmatpush.msk.msra.mxu0 %vm76_vm0, %v31_v2  ;;  %v66_v3 = vld [vmem:[%s2659_s0] sm:$0xff]  ;;  %v2247_v34 = vld [vmem:[#allocation2 + $0x58] sm:$0xff]  ;;  %v2251_v35 = vld [vmem:[#allocation2 + $0x50] sm:$0xff]  ;;  %vm103_vm6 = vcmask 261120   ;;  %vm171_vm7 = vcmask 523264   ;;  %s2166_s24 = smov 96  }
   0x9   :  { %1846 = vmatmul.msk.f32.vlgmr.msra.gmra.mxu0 %vm69_vm1, %v66_v3  ;;  %120 = vmatpush.msra.mxu1 %v2201_v1  ;;  %v2231_v7 = vld [vmem:[%s2661_s2] sm:$0x3f]  ;;  %v2256_v36 = vld [vmem:[#allocation2 + $0x48] sm:$0xff]  ;;  %v2266_v38 = vld [vmem:[#allocation2 + $0x38] sm:$0xff]  ;;  %s2167_s29 = smov 124   ;;  %s2171_s5 = smov 88  }
   0xa   :  { %247 = vmatpush.msra.mxu3 %v2201_v1  ;;  %v68_v8 = vperm.slane %v2231_v7, 0  ;;  %v2245_v33 = vld [vmem:[#allocation2 + $0x60] sm:$0xff]  ;;  %v2271_v39 = vld [vmem:[#allocation2 + $0x30] sm:$0xff]  ;;  %v2281_v42 = vld [vmem:[#allocation2 + $0x28] sm:$0xff]  ;;  %v2314_v45 = vperm.slane %v2231_v7, 1  ;;  %s2172_s6 = smov 89  }
   0xb   :  { %121 = vmatpush.msra.mxu1 %v2208_v4  ;;  %183 = vmatpush.msra.mxu2 %v2245_v33  ;;  %v2261_v37 = vld [vmem:[#allocation2 + $0x40] sm:$0xff]  ;;  %s2173_s7 = smov 90   ;;  %s2174_s8 = smov 91  }
   0xc   :  { %248 = vmatpush.msra.mxu3 %v2208_v4  ;;  %320 = vmatpush.msrb.mxu0 %v2245_v33  ;;  %s2175_s9 = smov [#allocation5]   ;;  %s1835_s13 = sshll.u32 %s2662_s3, 4  ;;  %s1836_s13 = int_to_ptr.hbm [resolvable:$true] %s1835_s13 }
   0xd   :  { %122 = vmatpush.msra.mxu1 %v2213_v5  ;;  %184 = vmatpush.msra.mxu2 %v2247_v34  ;;  %s1833_s10 = sshll.u32 %s2175_s9, 4  ;;  %s1834_s10 = int_to_ptr.vmem [resolvable:$true] %s1833_s10 }
   0xe   :  { %123 = vmatmul.f32.vlgmr.msra.gmra.mxu1 %v2163_v6  ;;  %249 = vmatpush.msra.mxu3 %v2213_v5 }
   0xf   :  { %386 = vmatpush.msrb.mxu1 %v2199_v0  ;;  %321 = vmatpush.msrb.mxu0 %v2247_v34 }
  0x10   :  { %460 = vmatpush.msrb.mxu3 %v2245_v33  ;;  %185 = vmatpush.msra.mxu2 %v2251_v35 }
  0x11   :  { %387 = vmatpush.msrb.mxu1 %v2201_v1  ;;  %322 = vmatpush.msrb.mxu0 %v2251_v35 }
  0x12   :  { %461 = vmatpush.msrb.mxu3 %v2247_v34  ;;  %186 = vmatpush.msra.mxu2 %v2256_v36 }
  0x13   :  { %388 = vmatpush.msrb.mxu1 %v2208_v4  ;;  %323 = vmatpush.msrb.mxu0 %v2256_v36 }
  0x14   :  { %462 = vmatpush.msrb.mxu3 %v2251_v35  ;;  %187 = vmatpush.msra.mxu2 %v2261_v37 }
  0x15   :  { %389 = vmatpush.msrb.mxu1 %v2213_v5  ;;  %324 = vmatpush.msrb.mxu0 %v2261_v37 }
  0x16   :  { %463 = vmatpush.msrb.mxu3 %v2256_v36  ;;  %188 = vmatpush.msra.mxu2 %v2266_v38 }
  0x17   :  { %526 = vmatpush.msra.mxu1 %v2199_v0  ;;  %325 = vmatpush.msrb.mxu0 %v2266_v38 }
  0x18   :  { %464 = vmatpush.msrb.mxu3 %v2261_v37  ;;  %189 = vmatpush.msra.mxu2 %v2271_v39 }
  0x19   :  { %527 = vmatpush.msra.mxu1 %v2201_v1  ;;  %326 = vmatpush.msrb.mxu0 %v2271_v39 }
  0x1a   :  { %465 = vmatpush.msrb.mxu3 %v2266_v38  ;;  %190 = vmatpush.msra.mxu2 %v2281_v42 }
  0x1b   :  { %528 = vmatpush.msra.mxu1 %v2208_v4  ;;  %327 = vmatpush.msrb.mxu0 %v2281_v42 }
  0x1c   :  { %466 = vmatpush.msrb.mxu3 %v2271_v39  ;;  %600 = vmatpush.msrb.mxu2 %v2245_v33 }
  0x1d   :  { %529 = vmatpush.msra.mxu1 %v2213_v5  ;;  %872 = vmatpush.msra.mxu0 %v2245_v33 }
  0x1e   :  { %467 = vmatpush.msrb.mxu3 %v2281_v42  ;;  %601 = vmatpush.msrb.mxu2 %v2247_v34 }
  0x1f   :  { %873 = vmatpush.msra.mxu0 %v2247_v34 }
  0x20   :  { %602 = vmatpush.msrb.mxu2 %v2251_v35 }
  0x21   :  { %874 = vmatpush.msra.mxu0 %v2251_v35 }
  0x22   :  { %603 = vmatpush.msrb.mxu2 %v2256_v36 }
  0x23   :  { %875 = vmatpush.msra.mxu0 %v2256_v36 }
  0x24   :  { %604 = vmatpush.msrb.mxu2 %v2261_v37 }
  0x25   :  { %876 = vmatpush.msra.mxu0 %v2261_v37 }
  0x26   :  { %605 = vmatpush.msrb.mxu2 %v2266_v38 }
  0x27   :  { %877 = vmatpush.msra.mxu0 %v2266_v38 }
  0x28   :  { %606 = vmatpush.msrb.mxu2 %v2271_v39 }
  0x29   :  { %878 = vmatpush.msra.mxu0 %v2271_v39 }
  0x2a   :  { %607 = vmatpush.msrb.mxu2 %v2281_v42 }
  0x2b   :  { %879 = vmatpush.msra.mxu0 %v2281_v42 }
  0x86   :  { %v97_v9 = vpop.f32.mrf.mxu0 }
  0x87   :  { %v2236_v10 = vadd.f32 %v97_v9, %v68_v8 }
  0x8b   :  { %v124_v11 = vpop.f32.mrf.mxu1 }
  0x8c   :  { %v127_v12 = vadd.f32 %v124_v11, %v2236_v10 }
  0x8e   :  { %1914 = vtanh.f32 %v127_v12  ;;  %v1848_v14 = vmul.f32 -1.442695, %v127_v12 }
  0x90   :  { %1916 = vpow2.f32 %v1848_v14 }
  0x94   :  { %v1915_v13 = vpop.eup %1914 }
  0x95   :  { %150 = vrot.lane.b32.xlu0 %v1915_v13, %s2164_s22 }
  0x96   :  { %v1917_v15 = vpop.eup %1916 }
  0x97   :  { %v131_v16 = vadd.f32 1.0, %v1917_v15 }
  0x99   :  { %1918 = vrcp.f32 %v131_v16  ;;  %v143_v22 = vand.u32 2147483648, %v131_v16  ;;  %vm137_vm3 = vweird.f32 %v131_v16  ;;  %v141_v23 = vand.u32 2147483647, %v131_v16 }
  0x9b   :  { %v144_v25 = vor.u32 1.1754944e-38, %v143_v22  ;;  %vm142_vm5 = vcmp.eq.f32.partialorder %v141_v23, 8.507059e+37 }
  0x9f   :  { %v1919_v17 = vpop.eup %1918 }
  0xa0   :  { %v133_v18 = vmul.f32 %v1919_v17, %v131_v16  ;;  %vm138_vm2 = vweird.f32 %v1919_v17 }
  0xa1   :  { %vm139_vm4 = vmor %vm137_vm3, %vm138_vm2 }
  0xa2   :  { %v134_v19 = vsub.f32 1.0, %v133_v18 }
  0xa4   :  { %v135_v20 = vmul.f32 %v1919_v17, %v134_v19 }
  0xa6   :  { %v136_v21 = vadd.f32 %v1919_v17, %v135_v20 }
  0xa8   :  { %v140_v24 = vsel %vm139_vm4, %v1919_v17, %v136_v21 }
  0xa9   :  { %v145_v27 = vsel %vm142_vm5, %v144_v25, %v140_v24 }
  0xaa   :  { %v148_v29 = vmul.f32 0.0, %v145_v27 }
 0x107   :  { %v151_v26 = vpop.permute.xlu0 %150 }
 0x108   :  { %v153_v28 = vmul.f32 %v151_v26, %v145_v27 }
 0x10a   :  { %155 = vrot.lane.b32.xlu0 %v153_v28, %s2164_s22 }
 0x17c   :  { %v156_v30 = vpop.permute.xlu0 %155 }
 0x17d   :  { %v2241_v31 = vadd.f32 %v156_v30, %v148_v29 }
 0x17f   :  { %1920 = vtanh.f32 %v2241_v31  ;;  %v279_v29 = vrot.slane %v2241_v31, 6 }
 0x185   :  { %v1921_v32 = vpop.eup %1920 }
 0x186   :  { %161 = vrot.lane.b32.xlu1 %v1921_v32, %s2164_s22 }
 0x1f8   :  { %v162_v40 = vpop.permute.xlu1 %161 }
 0x1f9   :  { %v164_v41 = vmul.f32 %v162_v40, %v145_v27 }
 0x1fb   :  { %166 = vrot.lane.b32.xlu1 %v164_v41, %s2165_s23 }
 0x26d   :  { %v167_v43 = vpop.permute.xlu1 %166 }
 0x26e   :  { %1851 = vmatmul.msk.f32.vlgmr.msra.gmra.mxu3 %vm103_vm6, %v167_v43  ;;  %v169_v44 = vsel %vm103_vm6, %v167_v43, 0.0 }
 0x26f   :  { %1849 = vmatmul.msk.f32.vlgmr.msra.gmra.mxu2 %vm171_vm7, %v169_v44  ;;  %798 = vmatpush.msra.mxu3 %v2199_v0 }
 0x270   :  { %666 = vmatpush.msra.mxu2 %v2199_v0 }
 0x271   :  { %799 = vmatpush.msra.mxu3 %v2201_v1 }
 0x272   :  { %667 = vmatpush.msra.mxu2 %v2201_v1 }
 0x273   :  { %800 = vmatpush.msra.mxu3 %v2208_v4 }
 0x274   :  { %668 = vmatpush.msra.mxu2 %v2208_v4 }
 0x275   :  { %801 = vmatpush.msra.mxu3 %v2213_v5 }
 0x276   :  { %669 = vmatpush.msra.mxu2 %v2213_v5 }
 0x2f1   :  { %v251_v46 = vpop.f32.mrf.mxu3 }
 0x2f2   :  { %v192_v47 = vpop.f32.mrf.mxu2  ;;  %v255_v49 = vrot.slane %v251_v46, 6 }
 0x2f3   :  { %v193_v48 = vadd.f32 %v192_v47, %v2314_v45 }
 0x2f4   :  { %v257_v50 = vadd.f32 %v255_v49, %v2236_v10 }
 0x2f5   :  { %1922 = vtanh.f32 %v193_v48  ;;  %v1850_v53 = vmul.f32 -1.442695, %v193_v48 }
 0x2f6   :  { %1924 = vtanh.f32 %v257_v50  ;;  %v1852_v54 = vmul.f32 -1.442695, %v257_v50  ;;  %v67_v50 = vld [vmem:[%s2659_s0 + $0x8] sm:$0xff] }
 0x2f7   :  { %1926 = vpow2.f32 %v1850_v53  ;;  %1847 = vmatmul.msk.f32.gmra.mxu0 %vm69_vm1, %v67_v50 }
 0x2f8   :  { %1928 = vpow2.f32 %v1852_v54 }
 0x2fb   :  { %v1923_v51 = vpop.eup %1922 }
 0x2fc   :  { %217 = vrot.lane.b32.xlu2 %v1923_v51, %s2164_s22  ;;  %v1925_v52 = vpop.eup %1924 }
 0x2fd   :  { %v1927_v55 = vpop.eup %1926 }
 0x2fe   :  { %v198_v56 = vadd.f32 1.0, %v1927_v55  ;;  %v1929_v57 = vpop.eup %1928 }
 0x2ff   :  { %v261_v58 = vadd.f32 1.0, %v1929_v57 }
 0x300   :  { %1930 = vrcp.f32 %v198_v56  ;;  %v210_v9 = vand.u32 2147483648, %v198_v56  ;;  %vm204_vm9 = vweird.f32 %v198_v56  ;;  %v208_v11 = vand.u32 2147483647, %v198_v56 }
 0x301   :  { %1932 = vrcp.f32 %v261_v58  ;;  %v273_v19 = vand.u32 2147483648, %v261_v58  ;;  %vm267_vm13 = vweird.f32 %v261_v58  ;;  %v271_v20 = vand.u32 2147483647, %v261_v58 }
 0x302   :  { %v211_v14 = vor.u32 1.1754944e-38, %v210_v9  ;;  %vm209_vm11 = vcmp.eq.f32.partialorder %v208_v11, 8.507059e+37 }
 0x303   :  { %v274_v22 = vor.u32 1.1754944e-38, %v273_v19  ;;  %vm272_vm15 = vcmp.eq.f32.partialorder %v271_v20, 8.507059e+37 }
 0x304   :  { %283 = vrot.lane.b32.xlu2 %v1925_v52, %s2164_s22 }
 0x306   :  { %v1931_v59 = vpop.eup %1930 }
 0x307   :  { %v200_v60 = vmul.f32 %v1931_v59, %v198_v56  ;;  %v1933_v62 = vpop.eup %1932  ;;  %vm205_vm8 = vweird.f32 %v1931_v59 }
 0x308   :  { %v263_v2 = vmul.f32 %v1933_v62, %v261_v58  ;;  %vm206_vm10 = vmor %vm204_vm9, %vm205_vm8  ;;  %vm268_vm12 = vweird.f32 %v1933_v62 }
 0x309   :  { %v201_v61 = vsub.f32 1.0, %v200_v60  ;;  %vm269_vm14 = vmor %vm267_vm13, %vm268_vm12 }
 0x30a   :  { %v264_v6 = vsub.f32 1.0, %v263_v2 }
 0x30b   :  { %v202_v63 = vmul.f32 %v1931_v59, %v201_v61 }
 0x30c   :  { %v265_v13 = vmul.f32 %v1933_v62, %v264_v6 }
 0x30d   :  { %v203_v3 = vadd.f32 %v1931_v59, %v202_v63 }
 0x30e   :  { %v266_v18 = vadd.f32 %v1933_v62, %v265_v13 }
 0x30f   :  { %v207_v12 = vsel %vm206_vm10, %v1931_v59, %v203_v3 }
 0x310   :  { %v212_v16 = vsel %vm209_vm11, %v211_v14, %v207_v12  ;;  %v270_v21 = vsel %vm269_vm14, %v1933_v62, %v266_v18 }
 0x311   :  { %v275_v23 = vsel %vm272_vm15, %v274_v22, %v270_v21  ;;  %v215_v26 = vmul.f32 0.0, %v212_v16 }
 0x312   :  { %v281_v30 = vmul.f32 %v279_v29, %v275_v23 }
 0x356   :  { %v218_v15 = vpop.permute.xlu2 %217 }
 0x357   :  { %v220_v17 = vmul.f32 %v218_v15, %v212_v16 }
 0x359   :  { %222 = vrot.lane.b32.xlu0 %v220_v17, %s2164_s22 }
 0x35e   :  { %v284_v24 = vpop.permute.xlu2 %283 }
 0x35f   :  { %v286_v25 = vmul.f32 %v284_v24, %v275_v23 }
 0x361   :  { %288 = vrot.lane.b32.xlu1 %v286_v25, %s2164_s22 }
 0x374   :  { %v2349_v56 = vpop.f32.mrf.mxu0 }
 0x3cb   :  { %v223_v27 = vpop.permute.xlu0 %222 }
 0x3cc   :  { %v2322_v28 = vadd.f32 %v223_v27, %v215_v26 }
 0x3ce   :  { %1934 = vtanh.f32 %v2322_v28 }
 0x3d3   :  { %v289_v32 = vpop.permute.xlu1 %288 }
 0x3d4   :  { %v1935_v40 = vpop.eup %1934  ;;  %v2326_v41 = vadd.f32 %v289_v32, %v281_v30 }
 0x3d5   :  { %228 = vrot.lane.b32.xlu2 %v1935_v40, %s2164_s22 }
 0x3d6   :  { %1936 = vtanh.f32 %v2326_v41 }
 0x3dc   :  { %v1937_v43 = vpop.eup %1936 }
 0x3dd   :  { %294 = vrot.lane.b32.xlu0 %v1937_v43, %s2164_s22 }
 0x42f   :  { %v229_v44 = vpop.permute.xlu2 %228 }
 0x430   :  { %v231_v46 = vmul.f32 %v229_v44, %v212_v16 }
 0x432   :  { %v303_v47 = vrot.slane %v231_v46, 6 }
 0x434   :  { %304 = vrot.lane.b32.xlu2 %v303_v47, %s2166_s24 }
 0x44f   :  { %v295_v48 = vpop.permute.xlu0 %294 }
 0x450   :  { %v297_v31 = vmul.f32 %v295_v48, %v275_v23 }
 0x452   :  { %v369_v49 = vrot.slane %v297_v31, 2  ;;  %299 = vrot.lane.b32.xlu1 %v297_v31, %s2165_s23  ;;  %v419_v31 = vrot.slane %v2326_v41, 6 }
 0x454   :  { %370 = vrot.lane.b32.xlu0 %v369_v49, %s2165_s23 }
 0x48e   :  { %v305_v51 = vpop.permute.xlu2 %304 }
 0x4c4   :  { %v300_v52 = vpop.permute.xlu1 %299 }
 0x4c5   :  { %v307_v53 = vsel %vm103_vm6, %v300_v52, %v305_v51 }
 0x4c6   :  { %v309_v54 = vrot.slane %v307_v53, 2  ;;  %v371_v55 = vpop.permute.xlu0 %370 }
 0x4c7   :  { %1855 = vmatmul.msk.f32.vlgmr.msrb.gmra.mxu1 %vm103_vm6, %v371_v55 }
 0x4c8   :  { %1853 = vmatmul.msk.f32.vlgmr.msrb.gmra.mxu0 %vm171_vm7, %v309_v54  ;;  %735 = vmatpush.msrb.mxu1 %v2245_v33 }
 0x4ca   :  { %736 = vmatpush.msrb.mxu1 %v2247_v34 }
 0x4cc   :  { %737 = vmatpush.msrb.mxu1 %v2251_v35 }
 0x4ce   :  { %738 = vmatpush.msrb.mxu1 %v2256_v36 }
 0x4d0   :  { %739 = vmatpush.msrb.mxu1 %v2261_v37 }
 0x4d2   :  { %740 = vmatpush.msrb.mxu1 %v2266_v38 }
 0x4d4   :  { %741 = vmatpush.msrb.mxu1 %v2271_v39 }
 0x4d6   :  { %742 = vmatpush.msrb.mxu1 %v2281_v42 }
 0x544   :  { %v391_v57 = vpop.f32.mrf.mxu1 }
 0x545   :  { %v395_v58 = vrot.slane %v391_v57, 4  ;;  %v329_v59 = vpop.f32.mrf.mxu0 }
 0x546   :  { %v330_v60 = vadd.f32 %v329_v59, %v2314_v45 }
 0x547   :  { %v397_v61 = vadd.f32 %v395_v58, %v2236_v10 }
 0x548   :  { %1938 = vtanh.f32 %v330_v60  ;;  %v1854_v11 = vmul.f32 -1.442695, %v330_v60 }
 0x549   :  { %1940 = vtanh.f32 %v397_v61  ;;  %v1856_v2 = vmul.f32 -1.442695, %v397_v61 }
 0x54b   :  { %1942 = vpow2.f32 %v1856_v2 }
 0x54e   :  { %v1939_v62 = vpop.eup %1938 }
 0x54f   :  { %v1941_v63 = vpop.eup %1940  ;;  %354 = vrot.lane.b32.xlu1 %v1939_v62, %s2164_s22 }
 0x550   :  { %423 = vrot.lane.b32.xlu2 %v1941_v63, %s2164_s22 }
 0x551   :  { %v1943_v3 = vpop.eup %1942 }
 0x552   :  { %v401_v6 = vadd.f32 1.0, %v1943_v3 }
 0x554   :  { %1944 = vrcp.f32 %v401_v6  ;;  %v413_v18 = vand.u32 2147483648, %v401_v6  ;;  %vm407_vm3 = vweird.f32 %v401_v6  ;;  %v411_v19 = vand.u32 2147483647, %v401_v6 }
 0x555   :  { %1946 = vpow2.f32 %v1854_v11 }
 0x556   :  { %v414_v21 = vor.u32 1.1754944e-38, %v413_v18  ;;  %vm412_vm5 = vcmp.eq.f32.partialorder %v411_v19, 8.507059e+37 }
 0x55a   :  { %v1945_v9 = vpop.eup %1944 }
 0x55b   :  { %v403_v12 = vmul.f32 %v1945_v9, %v401_v6  ;;  %v1947_v14 = vpop.eup %1946  ;;  %vm408_vm2 = vweird.f32 %v1945_v9 }
 0x55c   :  { %v335_v16 = vadd.f32 1.0, %v1947_v14  ;;  %vm409_vm4 = vmor %vm407_vm3, %vm408_vm2 }
 0x55d   :  { %v404_v13 = vsub.f32 1.0, %v403_v12 }
 0x55e   :  { %1948 = vrcp.f32 %v335_v16  ;;  %v347_v32 = vand.u32 2147483648, %v335_v16  ;;  %vm341_vm9 = vweird.f32 %v335_v16  ;;  %v345_v40 = vand.u32 2147483647, %v335_v16 }
 0x55f   :  { %v405_v15 = vmul.f32 %v1945_v9, %v404_v13 }
 0x560   :  { %v348_v44 = vor.u32 1.1754944e-38, %v347_v32  ;;  %vm346_vm11 = vcmp.eq.f32.partialorder %v345_v40, 8.507059e+37 }
 0x561   :  { %v406_v17 = vadd.f32 %v1945_v9, %v405_v15 }
 0x563   :  { %v410_v20 = vsel %vm409_vm4, %v1945_v9, %v406_v17 }
 0x564   :  { %v415_v22 = vsel %vm412_vm5, %v414_v21, %v410_v20  ;;  %v1949_v24 = vpop.eup %1948 }
 0x565   :  { %v337_v26 = vmul.f32 %v1949_v24, %v335_v16  ;;  %vm342_vm8 = vweird.f32 %v1949_v24  ;;  %v421_v49 = vmul.f32 %v419_v31, %v415_v22 }
 0x566   :  { %vm343_vm10 = vmor %vm341_vm9, %vm342_vm8 }
 0x567   :  { %v338_v27 = vsub.f32 1.0, %v337_v26 }
 0x569   :  { %v339_v29 = vmul.f32 %v1949_v24, %v338_v27 }
 0x56b   :  { %v340_v30 = vadd.f32 %v1949_v24, %v339_v29 }
 0x56d   :  { %v344_v43 = vsel %vm343_vm10, %v1949_v24, %v340_v30 }
 0x56e   :  { %v349_v47 = vsel %vm346_vm11, %v348_v44, %v344_v43 }
 0x56f   :  { %v352_v53 = vmul.f32 %v349_v47, %v2322_v28 }
 0x5aa   :  { %v424_v23 = vpop.permute.xlu2 %423 }
 0x5ab   :  { %v426_v25 = vmul.f32 %v424_v23, %v415_v22 }
 0x5ad   :  { %428 = vrot.lane.b32.xlu1 %v426_v25, %s2164_s22 }
 0x5c1   :  { %v355_v46 = vpop.permute.xlu1 %354 }
 0x5c2   :  { %v357_v48 = vmul.f32 %v355_v46, %v349_v47 }
 0x5c4   :  { %359 = vrot.lane.b32.xlu0 %v357_v48, %s2164_s22 }
 0x61f   :  { %v429_v50 = vpop.permute.xlu1 %428 }
 0x620   :  { %v2358_v51 = vadd.f32 %v429_v50, %v421_v49 }
 0x622   :  { %1950 = vtanh.f32 %v2358_v51 }
 0x628   :  { %v1951_v52 = vpop.eup %1950 }
 0x629   :  { %434 = vrot.lane.b32.xlu0 %v1951_v52, %s2164_s22 }
 0x636   :  { %v360_v54 = vpop.permute.xlu0 %359 }
 0x637   :  { %v2363_v55 = vadd.f32 %v360_v54, %v352_v53 }
 0x639   :  { %1952 = vtanh.f32 %v2363_v55 }
 0x63f   :  { %v1953_v57 = vpop.eup %1952 }
 0x640   :  { %365 = vrot.lane.b32.xlu2 %v1953_v57, %s2164_s22 }
 0x69a   :  { %v366_v41 = vpop.permute.xlu2 %365 }
 0x69b   :  { %v368_v58 = vmul.f32 %v366_v41, %v349_v47  ;;  %v435_v59 = vpop.permute.xlu0 %434 }
 0x69c   :  { %v437_v60 = vmul.f32 %v435_v59, %v415_v22  ;;  %v559_v59 = vrot.slane %v2358_v51, 6 }
 0x69d   :  { %v443_v61 = vrot.slane %v368_v58, 4 }
 0x69e   :  { %v509_v62 = vrot.slane %v437_v60, 4  ;;  %439 = vrot.lane.b32.xlu1 %v437_v60, %s2165_s23 }
 0x69f   :  { %444 = vrot.lane.b32.xlu2 %v443_v61, %s2166_s24 }
 0x6a0   :  { %510 = vrot.lane.b32.xlu0 %v509_v62, %s2165_s23 }
 0x6f9   :  { %v445_v28 = vpop.permute.xlu2 %444 }
 0x710   :  { %v440_v63 = vpop.permute.xlu1 %439 }
 0x711   :  { %v447_v2 = vsel %vm103_vm6, %v440_v63, %v445_v28 }
 0x712   :  { %v449_v3 = vrot.slane %v447_v2, 4  ;;  %v511_v6 = vpop.permute.xlu0 %510 }
 0x713   :  { %1859 = vmatmul.msk.f32.vlgmr.msra.gmra.mxu1 %vm103_vm6, %v511_v6 }
 0x714   :  { %1857 = vmatmul.msk.f32.vlgmr.msrb.gmra.mxu3 %vm171_vm7, %v449_v3  ;;  %1078 = vmatpush.msra.mxu1 %v2199_v0 }
 0x715   :  { %1012 = vmatpush.msrb.mxu3 %v2245_v33 }
 0x716   :  { %1079 = vmatpush.msra.mxu1 %v2201_v1 }
 0x717   :  { %1013 = vmatpush.msrb.mxu3 %v2247_v34 }
 0x718   :  { %1080 = vmatpush.msra.mxu1 %v2208_v4 }
 0x719   :  { %1014 = vmatpush.msrb.mxu3 %v2251_v35 }
 0x71a   :  { %1081 = vmatpush.msra.mxu1 %v2213_v5 }
 0x71b   :  { %1015 = vmatpush.msrb.mxu3 %v2256_v36 }
 0x71d   :  { %1016 = vmatpush.msrb.mxu3 %v2261_v37 }
 0x71f   :  { %1017 = vmatpush.msrb.mxu3 %v2266_v38 }
 0x721   :  { %1018 = vmatpush.msrb.mxu3 %v2271_v39 }
 0x723   :  { %1019 = vmatpush.msrb.mxu3 %v2281_v42 }
 0x790   :  { %v531_v9 = vpop.f32.mrf.mxu1 }
 0x791   :  { %v535_v11 = vrot.slane %v531_v9, 2 }
 0x793   :  { %v537_v12 = vadd.f32 %v535_v11, %v2236_v10 }
 0x795   :  { %1954 = vtanh.f32 %v537_v12  ;;  %v1860_v17 = vmul.f32 -1.442695, %v537_v12 }
 0x797   :  { %v469_v13 = vpop.f32.mrf.mxu3 }
 0x798   :  { %v470_v14 = vadd.f32 %v469_v13, %v2314_v45 }
 0x79a   :  { %1956 = vtanh.f32 %v470_v14  ;;  %v1858_v22 = vmul.f32 -1.442695, %v470_v14 }
 0x79b   :  { %v1955_v15 = vpop.eup %1954  ;;  %1958 = vpow2.f32 %v1860_v17 }
 0x79c   :  { %563 = vrot.lane.b32.xlu2 %v1955_v15, %s2164_s22 }
 0x7a0   :  { %v1957_v16 = vpop.eup %1956 }
 0x7a1   :  { %494 = vrot.lane.b32.xlu1 %v1957_v16, %s2164_s22  ;;  %v1959_v18 = vpop.eup %1958 }
 0x7a2   :  { %v541_v19 = vadd.f32 1.0, %v1959_v18 }
 0x7a4   :  { %1960 = vrcp.f32 %v541_v19  ;;  %v553_v26 = vand.u32 2147483648, %v541_v19  ;;  %vm547_vm13 = vweird.f32 %v541_v19  ;;  %v551_v27 = vand.u32 2147483647, %v541_v19 }
 0x7a5   :  { %1962 = vpow2.f32 %v1858_v22 }
 0x7a6   :  { %v554_v32 = vor.u32 1.1754944e-38, %v553_v26  ;;  %vm552_vm15 = vcmp.eq.f32.partialorder %v551_v27, 8.507059e+37 }
 0x7aa   :  { %v1961_v20 = vpop.eup %1960 }
 0x7ab   :  { %v543_v21 = vmul.f32 %v1961_v20, %v541_v19  ;;  %vm548_vm12 = vweird.f32 %v1961_v20  ;;  %v1963_v25 = vpop.eup %1962 }
 0x7ac   :  { %vm549_vm14 = vmor %vm547_vm13, %vm548_vm12  ;;  %v475_v29 = vadd.f32 1.0, %v1963_v25 }
 0x7ad   :  { %v544_v10 = vsub.f32 1.0, %v543_v21 }
 0x7ae   :  { %1964 = vrcp.f32 %v475_v29  ;;  %v487_v50 = vand.u32 2147483648, %v475_v29  ;;  %vm481_vm3 = vweird.f32 %v475_v29  ;;  %v485_v52 = vand.u32 2147483647, %v475_v29 }
 0x7af   :  { %v545_v23 = vmul.f32 %v1961_v20, %v544_v10 }
 0x7b0   :  { %v488_v54 = vor.u32 1.1754944e-38, %v487_v50  ;;  %vm486_vm5 = vcmp.eq.f32.partialorder %v485_v52, 8.507059e+37 }
 0x7b1   :  { %v546_v24 = vadd.f32 %v1961_v20, %v545_v23 }
 0x7b3   :  { %v550_v30 = vsel %vm549_vm14, %v1961_v20, %v546_v24 }
 0x7b4   :  { %v555_v40 = vsel %vm552_vm15, %v554_v32, %v550_v30  ;;  %v1965_v46 = vpop.eup %1964 }
 0x7b5   :  { %v477_v47 = vmul.f32 %v1965_v46, %v475_v29  ;;  %vm482_vm2 = vweird.f32 %v1965_v46  ;;  %v561_v60 = vmul.f32 %v559_v59, %v555_v40 }
 0x7b6   :  { %vm483_vm4 = vmor %vm481_vm3, %vm482_vm2 }
 0x7b7   :  { %v478_v48 = vsub.f32 1.0, %v477_v47 }
 0x7b9   :  { %v479_v31 = vmul.f32 %v1965_v46, %v478_v48 }
 0x7bb   :  { %v480_v49 = vadd.f32 %v1965_v46, %v479_v31 }
 0x7bd   :  { %v484_v53 = vsel %vm483_vm4, %v1965_v46, %v480_v49 }
 0x7be   :  { %v489_v41 = vsel %vm486_vm5, %v488_v54, %v484_v53 }
 0x7bf   :  { %v492_v63 = vmul.f32 %v489_v41, %v2363_v55 }
 0x7f6   :  { %v564_v43 = vpop.permute.xlu2 %563 }
 0x7f7   :  { %v566_v44 = vmul.f32 %v564_v43, %v555_v40 }
 0x7f9   :  { %568 = vrot.lane.b32.xlu1 %v566_v44, %s2164_s22 }
 0x813   :  { %v495_v57 = vpop.permute.xlu1 %494 }
 0x814   :  { %v497_v58 = vmul.f32 %v495_v57, %v489_v41 }
 0x816   :  { %499 = vrot.lane.b32.xlu0 %v497_v58, %s2164_s22 }
 0x86b   :  { %v569_v61 = vpop.permute.xlu1 %568 }
 0x86c   :  { %v2392_v62 = vadd.f32 %v569_v61, %v561_v60 }
 0x86e   :  { %1966 = vtanh.f32 %v2392_v62 }
 0x874   :  { %v1967_v28 = vpop.eup %1966 }
 0x875   :  { %574 = vrot.lane.b32.xlu0 %v1967_v28, %s2164_s22 }
 0x888   :  { %v500_v2 = vpop.permute.xlu0 %499 }
 0x889   :  { %v2397_v3 = vadd.f32 %v500_v2, %v492_v63 }
 0x88b   :  { %1968 = vtanh.f32 %v2397_v3 }
 0x891   :  { %v1969_v6 = vpop.eup %1968 }
 0x892   :  { %505 = vrot.lane.b32.xlu2 %v1969_v6, %s2164_s22 }
 0x8e7   :  { %v575_v51 = vpop.permute.xlu0 %574 }
 0x8e8   :  { %v577_v9 = vmul.f32 %v575_v51, %v555_v40 }
 0x8ea   :  { %v649_v11 = vrot.slane %v577_v9, 6  ;;  %579 = vrot.lane.b32.xlu1 %v577_v9, %s2165_s23 }
 0x8ec   :  { %650 = vrot.lane.b32.xlu0 %v649_v11, %s2165_s23  ;;  %v506_v12 = vpop.permute.xlu2 %505 }
 0x8ed   :  { %v508_v13 = vmul.f32 %v506_v12, %v489_v41  ;;  %v696_v41 = vrot.slane %v2392_v62, 6 }
 0x8ef   :  { %v583_v14 = vrot.slane %v508_v13, 2 }
 0x8f1   :  { %584 = vrot.lane.b32.xlu2 %v583_v14, %s2166_s24 }
 0x94b   :  { %v585_v55 = vpop.permute.xlu2 %584 }
 0x95c   :  { %v580_v15 = vpop.permute.xlu1 %579 }
 0x95d   :  { %v587_v16 = vsel %vm103_vm6, %v580_v15, %v585_v55 }
 0x95e   :  { %v589_v17 = vrot.slane %v587_v16, 6  ;;  %v651_v18 = vpop.permute.xlu0 %650 }
 0x960   :  { %1861 = vmatmul.msk.f32.vlgmr.msrb.gmra.mxu2 %vm171_vm7, %v589_v17 }
 0x961   :  { %938 = vmatpush.msrb.mxu2 %v2199_v0 }
 0x963   :  { %939 = vmatpush.msrb.mxu2 %v2201_v1 }
 0x965   :  { %940 = vmatpush.msrb.mxu2 %v2208_v4  ;;  %v2423_v4 = vadd.f32 %v2349_v56, %v68_v8 }
 0x967   :  { %941 = vmatpush.msrb.mxu2 %v2213_v5 }
 0x968   :  { %1863 = vmatmul.msk.f32.vlgmr.msra.gmra.mxu2 %vm103_vm6, %v651_v18 }
 0x969   :  { %1152 = vmatpush.msra.mxu2 %v2245_v33 }
 0x96b   :  { %1153 = vmatpush.msra.mxu2 %v2247_v34 }
 0x96d   :  { %1154 = vmatpush.msra.mxu2 %v2251_v35 }
 0x96f   :  { %1155 = vmatpush.msra.mxu2 %v2256_v36 }
 0x971   :  { %1156 = vmatpush.msra.mxu2 %v2261_v37 }
 0x973   :  { %1157 = vmatpush.msra.mxu2 %v2266_v38 }
 0x975   :  { %1158 = vmatpush.msra.mxu2 %v2271_v39 }
 0x977   :  { %1159 = vmatpush.msra.mxu2 %v2281_v42 }
 0x9e3   :  { %v609_v0 = vpop.f32.mrf.mxu2 }
 0x9e4   :  { %v610_v1 = vadd.f32 %v609_v0, %v2314_v45 }
 0x9e6   :  { %1970 = vtanh.f32 %v610_v1  ;;  %v1862_v36 = vmul.f32 -1.442695, %v610_v1 }
 0x9eb   :  { %v671_v5 = vpop.f32.mrf.mxu2 }
 0x9ec   :  { %v1971_v33 = vpop.eup %1970  ;;  %v674_v34 = vadd.f32 %v671_v5, %v2423_v4 }
 0x9ed   :  { %634 = vrot.lane.b32.xlu2 %v1971_v33, %s2164_s22 }
 0x9ee   :  { %1972 = vtanh.f32 %v674_v34  ;;  %v1864_v8 = vmul.f32 -1.442695, %v674_v34 }
 0x9ef   :  { %1974 = vpow2.f32 %v1862_v36 }
 0x9f4   :  { %v1973_v35 = vpop.eup %1972 }
 0x9f5   :  { %700 = vrot.lane.b32.xlu1 %v1973_v35, %s2164_s22  ;;  %v1975_v37 = vpop.eup %1974 }
 0x9f6   :  { %v615_v38 = vadd.f32 1.0, %v1975_v37 }
 0x9f8   :  { %1976 = vrcp.f32 %v615_v38  ;;  %v627_v20 = vand.u32 2147483648, %v615_v38  ;;  %vm621_vm9 = vweird.f32 %v615_v38  ;;  %v625_v21 = vand.u32 2147483647, %v615_v38 }
 0x9f9   :  { %1978 = vpow2.f32 %v1864_v8 }
 0x9fa   :  { %v628_v23 = vor.u32 1.1754944e-38, %v627_v20  ;;  %vm626_vm11 = vcmp.eq.f32.partialorder %v625_v21, 8.507059e+37 }
 0x9fe   :  { %v1977_v39 = vpop.eup %1976 }
 0x9ff   :  { %v617_v7 = vmul.f32 %v1977_v39, %v615_v38  ;;  %vm622_vm8 = vweird.f32 %v1977_v39  ;;  %v1979_v22 = vpop.eup %1978 }
 0xa00   :  { %vm623_vm10 = vmor %vm621_vm9, %vm622_vm8  ;;  %v678_v24 = vadd.f32 1.0, %v1979_v22 }
 0xa01   :  { %v618_v42 = vsub.f32 1.0, %v617_v7 }
 0xa02   :  { %1980 = vrcp.f32 %v678_v24  ;;  %v690_v44 = vand.u32 2147483648, %v678_v24  ;;  %vm684_vm13 = vweird.f32 %v678_v24  ;;  %v688_v46 = vand.u32 2147483647, %v678_v24 }
 0xa03   :  { %v619_v56 = vmul.f32 %v1977_v39, %v618_v42 }
 0xa04   :  { %v691_v48 = vor.u32 1.1754944e-38, %v690_v44  ;;  %vm689_vm15 = vcmp.eq.f32.partialorder %v688_v46, 8.507059e+37 }
 0xa05   :  { %v620_v19 = vadd.f32 %v1977_v39, %v619_v56 }
 0xa07   :  { %v624_v10 = vsel %vm623_vm10, %v1977_v39, %v620_v19 }
 0xa08   :  { %v629_v26 = vsel %vm626_vm11, %v628_v23, %v624_v10  ;;  %v1981_v29 = vpop.eup %1980 }
 0xa09   :  { %v680_v30 = vmul.f32 %v1981_v29, %v678_v24  ;;  %vm685_vm12 = vweird.f32 %v1981_v29  ;;  %v632_v52 = vmul.f32 %v629_v26, %v2397_v3 }
 0xa0a   :  { %vm686_vm14 = vmor %vm684_vm13, %vm685_vm12 }
 0xa0b   :  { %v681_v32 = vsub.f32 1.0, %v680_v30 }
 0xa0d   :  { %v682_v40 = vmul.f32 %v1981_v29, %v681_v32 }
 0xa0f   :  { %v683_v43 = vadd.f32 %v1981_v29, %v682_v40 }
 0xa11   :  { %v687_v47 = vsel %vm686_vm14, %v1981_v29, %v683_v43 }
 0xa12   :  { %v692_v49 = vsel %vm689_vm15, %v691_v48, %v687_v47 }
 0xa13   :  { %v698_v58 = vmul.f32 %v696_v41, %v692_v49 }
 0xa47   :  { %v635_v25 = vpop.permute.xlu2 %634 }
 0xa48   :  { %v637_v27 = vmul.f32 %v635_v25, %v629_v26 }
 0xa4a   :  { %639 = vrot.lane.b32.xlu1 %v637_v27, %s2164_s22 }
 0xa67   :  { %v701_v31 = vpop.permute.xlu1 %700 }
 0xa68   :  { %v703_v50 = vmul.f32 %v701_v31, %v692_v49 }
 0xa6a   :  { %705 = vrot.lane.b32.xlu0 %v703_v50, %s2164_s22 }
 0xabc   :  { %v640_v53 = vpop.permute.xlu1 %639 }
 0xabd   :  { %v2431_v54 = vadd.f32 %v640_v53, %v632_v52 }
 0xabf   :  { %1982 = vtanh.f32 %v2431_v54 }
 0xac5   :  { %v1983_v57 = vpop.eup %1982 }
 0xac6   :  { %645 = vrot.lane.b32.xlu0 %v1983_v57, %s2164_s22 }
 0xadc   :  { %v706_v59 = vpop.permute.xlu0 %705 }
 0xadd   :  { %v2436_v60 = vadd.f32 %v706_v59, %v698_v58 }
 0xadf   :  { %1984 = vtanh.f32 %v2436_v60  ;;  %v831_v40 = vrot.slane %v2436_v60, 6 }
 0xae5   :  { %v1985_v61 = vpop.eup %1984 }
 0xae6   :  { %711 = vrot.lane.b32.xlu2 %v1985_v61, %s2164_s22 }
 0xb38   :  { %v646_v28 = vpop.permute.xlu0 %645 }
 0xb39   :  { %v648_v63 = vmul.f32 %v646_v28, %v629_v26 }
 0xb3b   :  { %720 = vrot.lane.b32.xlu2 %v648_v63, %s2166_s24 }
 0xb40   :  { %v712_v2 = vpop.permute.xlu2 %711 }
 0xb41   :  { %v714_v3 = vmul.f32 %v712_v2, %v692_v49 }
 0xb43   :  { %716 = vrot.lane.b32.xlu1 %v714_v3, %s2165_s23 }
 0xb95   :  { %v721_v6 = vpop.permute.xlu2 %720 }
 0xbb5   :  { %v717_v51 = vpop.permute.xlu1 %716 }
 0xbb6   :  { %v723_v62 = vsel %vm103_vm6, %v717_v51, %v721_v6  ;;  %1867 = vmatmul.msk.f32.vlgmr.msra.gmra.mxu3 %vm103_vm6, %v717_v51 }
 0xbb7   :  { %1865 = vmatmul.msk.f32.vlgmr.msrb.gmra.mxu1 %vm171_vm7, %v723_v62 }
 0xc34   :  { %v744_v9 = vpop.f32.mrf.mxu1 }
 0xc35   :  { %v745_v11 = vadd.f32 %v744_v9, %v2314_v45 }
 0xc37   :  { %1986 = vtanh.f32 %v745_v11  ;;  %v1866_v16 = vmul.f32 -1.442695, %v745_v11 }
 0xc39   :  { %v803_v12 = vpop.f32.mrf.mxu3 }
 0xc3a   :  { %v807_v13 = vrot.slane %v803_v12, 6 }
 0xc3c   :  { %v809_v14 = vadd.f32 %v807_v13, %v2423_v4 }
 0xc3d   :  { %v1987_v55 = vpop.eup %1986 }
 0xc3e   :  { %1988 = vtanh.f32 %v809_v14  ;;  %769 = vrot.lane.b32.xlu1 %v1987_v55, %s2164_s22  ;;  %v1868_v17 = vmul.f32 -1.442695, %v809_v14 }
 0xc3f   :  { %1990 = vpow2.f32 %v1866_v16 }
 0xc40   :  { %1992 = vpow2.f32 %v1868_v17 }
 0xc44   :  { %v1989_v15 = vpop.eup %1988 }
 0xc45   :  { %835 = vrot.lane.b32.xlu0 %v1989_v15, %s2164_s22  ;;  %v1991_v18 = vpop.eup %1990 }
 0xc46   :  { %v750_v0 = vadd.f32 1.0, %v1991_v18  ;;  %v1993_v1 = vpop.eup %1992 }
 0xc47   :  { %v813_v5 = vadd.f32 1.0, %v1993_v1 }
 0xc48   :  { %1994 = vrcp.f32 %v750_v0  ;;  %v762_v42 = vand.u32 2147483648, %v750_v0  ;;  %vm756_vm3 = vweird.f32 %v750_v0  ;;  %v760_v8 = vand.u32 2147483647, %v750_v0 }
 0xc49   :  { %1996 = vrcp.f32 %v813_v5  ;;  %v825_v24 = vand.u32 2147483648, %v813_v5  ;;  %vm819_vm9 = vweird.f32 %v813_v5  ;;  %v823_v25 = vand.u32 2147483647, %v813_v5 }
 0xc4a   :  { %v763_v20 = vor.u32 1.1754944e-38, %v762_v42  ;;  %vm761_vm5 = vcmp.eq.f32.partialorder %v760_v8, 8.507059e+37 }
 0xc4b   :  { %v826_v27 = vor.u32 1.1754944e-38, %v825_v24  ;;  %vm824_vm11 = vcmp.eq.f32.partialorder %v823_v25, 8.507059e+37 }
 0xc4e   :  { %v1995_v33 = vpop.eup %1994 }
 0xc4f   :  { %v752_v34 = vmul.f32 %v1995_v33, %v750_v0  ;;  %v1997_v35 = vpop.eup %1996  ;;  %vm757_vm2 = vweird.f32 %v1995_v33 }
 0xc50   :  { %v815_v37 = vmul.f32 %v1997_v35, %v813_v5  ;;  %vm758_vm4 = vmor %vm756_vm3, %vm757_vm2  ;;  %vm820_vm8 = vweird.f32 %v1997_v35 }
 0xc51   :  { %v753_v36 = vsub.f32 1.0, %v752_v34  ;;  %vm821_vm10 = vmor %vm819_vm9, %vm820_vm8 }
 0xc52   :  { %v816_v39 = vsub.f32 1.0, %v815_v37 }
 0xc53   :  { %v754_v38 = vmul.f32 %v1995_v33, %v753_v36 }
 0xc54   :  { %v817_v56 = vmul.f32 %v1997_v35, %v816_v39 }
 0xc55   :  { %v755_v7 = vadd.f32 %v1995_v33, %v754_v38 }
 0xc56   :  { %v818_v10 = vadd.f32 %v1997_v35, %v817_v56 }
 0xc57   :  { %v759_v19 = vsel %vm758_vm4, %v1995_v33, %v755_v7 }
 0xc58   :  { %v764_v22 = vsel %vm761_vm5, %v763_v20, %v759_v19  ;;  %v822_v26 = vsel %vm821_vm10, %v1997_v35, %v818_v10 }
 0xc59   :  { %v827_v29 = vsel %vm824_vm11, %v826_v27, %v822_v26  ;;  %v767_v48 = vmul.f32 %v764_v22, %v2431_v54 }
 0xc5a   :  { %v833_v43 = vmul.f32 %v831_v40, %v827_v29 }
 0xcb0   :  { %v770_v21 = vpop.permute.xlu1 %769 }
 0xcb1   :  { %v772_v23 = vmul.f32 %v770_v21, %v764_v22 }
 0xcb3   :  { %774 = vrot.lane.b32.xlu0 %v772_v23, %s2164_s22 }
 0xcb7   :  { %v836_v30 = vpop.permute.xlu0 %835 }
 0xcb8   :  { %v838_v32 = vmul.f32 %v836_v30, %v827_v29 }
 0xcba   :  { %840 = vrot.lane.b32.xlu2 %v838_v32, %s2164_s22 }
 0xd14   :  { %v841_v44 = vpop.permute.xlu2 %840 }
 0xd15   :  { %v2452_v46 = vadd.f32 %v841_v44, %v833_v43 }
 0xd17   :  { %1998 = vtanh.f32 %v2452_v46  ;;  %v971_v32 = vrot.slane %v2452_v46, 6 }
 0xd1d   :  { %v1999_v47 = vpop.eup %1998 }
 0xd1e   :  { %846 = vrot.lane.b32.xlu1 %v1999_v47, %s2164_s22 }
 0xd25   :  { %v775_v31 = vpop.permute.xlu0 %774 }
 0xd26   :  { %v2457_v49 = vadd.f32 %v775_v31, %v767_v48 }
 0xd28   :  { %2000 = vtanh.f32 %v2457_v49 }
 0xd2e   :  { %v2001_v50 = vpop.eup %2000 }
 0xd2f   :  { %780 = vrot.lane.b32.xlu2 %v2001_v50, %s2164_s22 }
 0xd89   :  { %v781_v52 = vpop.permute.xlu2 %780 }
 0xd8a   :  { %v783_v53 = vmul.f32 %v781_v52, %v764_v22 }
 0xd8c   :  { %v855_v57 = vrot.slane %v783_v53, 6 }
 0xd8e   :  { %856 = vrot.lane.b32.xlu2 %v855_v57, %s2166_s24 }
 0xd90   :  { %v847_v41 = vpop.permute.xlu1 %846 }
 0xd91   :  { %v849_v58 = vmul.f32 %v847_v41, %v827_v29 }
 0xd93   :  { %v921_v59 = vrot.slane %v849_v58, 2  ;;  %851 = vrot.lane.b32.xlu1 %v849_v58, %s2165_s23 }
 0xd95   :  { %922 = vrot.lane.b32.xlu0 %v921_v59, %s2165_s23 }
 0xde8   :  { %v857_v54 = vpop.permute.xlu2 %856 }
 0xe05   :  { %v852_v60 = vpop.permute.xlu1 %851 }
 0xe06   :  { %v859_v61 = vsel %vm103_vm6, %v852_v60, %v857_v54 }
 0xe07   :  { %v861_v28 = vrot.slane %v859_v61, 2  ;;  %v923_v63 = vpop.permute.xlu0 %922 }
 0xe08   :  { %1871 = vmatmul.msk.f32.vlgmr.msrb.gmra.mxu2 %vm103_vm6, %v923_v63 }
 0xe09   :  { %1869 = vmatmul.msk.f32.vlgmr.msra.gmra.mxu0 %vm171_vm7, %v861_v28 }
 0xe86   :  { %v881_v2 = vpop.f32.mrf.mxu0 }
 0xe87   :  { %v882_v3 = vadd.f32 %v881_v2, %v2314_v45 }
 0xe89   :  { %2002 = vtanh.f32 %v882_v3  ;;  %v1870_v12 = vmul.f32 -1.442695, %v882_v3 }
 0xe8b   :  { %v943_v6 = vpop.f32.mrf.mxu2 }
 0xe8c   :  { %v947_v51 = vrot.slane %v943_v6, 4 }
 0xe8e   :  { %v949_v62 = vadd.f32 %v947_v51, %v2423_v4 }
 0xe8f   :  { %v2003_v9 = vpop.eup %2002 }
 0xe90   :  { %2004 = vtanh.f32 %v949_v62  ;;  %906 = vrot.lane.b32.xlu0 %v2003_v9, %s2164_s22  ;;  %v1872_v13 = vmul.f32 -1.442695, %v949_v62 }
 0xe91   :  { %2006 = vpow2.f32 %v1870_v12 }
 0xe92   :  { %2008 = vpow2.f32 %v1872_v13 }
 0xe96   :  { %v2005_v11 = vpop.eup %2004 }
 0xe97   :  { %975 = vrot.lane.b32.xlu1 %v2005_v11, %s2164_s22  ;;  %v2007_v14 = vpop.eup %2006 }
 0xe98   :  { %v887_v55 = vadd.f32 1.0, %v2007_v14  ;;  %v2009_v15 = vpop.eup %2008 }
 0xe99   :  { %v953_v16 = vadd.f32 1.0, %v2009_v15 }
 0xe9a   :  { %2010 = vrcp.f32 %v887_v55  ;;  %v899_v36 = vand.u32 2147483648, %v887_v55  ;;  %vm893_vm13 = vweird.f32 %v887_v55  ;;  %v897_v37 = vand.u32 2147483647, %v887_v55 }
 0xe9b   :  { %2012 = vrcp.f32 %v953_v16  ;;  %v965_v20 = vand.u32 2147483648, %v953_v16  ;;  %vm959_vm3 = vweird.f32 %v953_v16  ;;  %v963_v21 = vand.u32 2147483647, %v953_v16 }
 0xe9c   :  { %v900_v7 = vor.u32 1.1754944e-38, %v899_v36  ;;  %vm898_vm15 = vcmp.eq.f32.partialorder %v897_v37, 8.507059e+37 }
 0xe9d   :  { %v966_v10 = vor.u32 1.1754944e-38, %v965_v20  ;;  %vm964_vm5 = vcmp.eq.f32.partialorder %v963_v21, 8.507059e+37 }
 0xea0   :  { %v2011_v17 = vpop.eup %2010 }
 0xea1   :  { %v889_v18 = vmul.f32 %v2011_v17, %v887_v55  ;;  %v2013_v0 = vpop.eup %2012  ;;  %vm894_vm12 = vweird.f32 %v2011_v17 }
 0xea2   :  { %v955_v5 = vmul.f32 %v2013_v0, %v953_v16  ;;  %vm895_vm14 = vmor %vm893_vm13, %vm894_vm12  ;;  %vm960_vm2 = vweird.f32 %v2013_v0 }
 0xea3   :  { %v890_v1 = vsub.f32 1.0, %v889_v18  ;;  %vm961_vm4 = vmor %vm959_vm3, %vm960_vm2 }
 0xea4   :  { %v956_v34 = vsub.f32 1.0, %v955_v5 }
 0xea5   :  { %v891_v33 = vmul.f32 %v2011_v17, %v890_v1 }
 0xea6   :  { %v957_v38 = vmul.f32 %v2013_v0, %v956_v34 }
 0xea7   :  { %v892_v35 = vadd.f32 %v2011_v17, %v891_v33 }
 0xea8   :  { %v958_v56 = vadd.f32 %v2013_v0, %v957_v38 }
 0xea9   :  { %v896_v39 = vsel %vm895_vm14, %v2011_v17, %v892_v35 }
 0xeaa   :  { %v901_v42 = vsel %vm898_vm15, %v900_v7, %v896_v39  ;;  %v962_v22 = vsel %vm961_vm4, %v2013_v0, %v958_v56 }
 0xeab   :  { %v967_v24 = vsel %vm964_vm5, %v966_v10, %v962_v22  ;;  %v904_v26 = vmul.f32 %v901_v42, %v2457_v49 }
 0xeac   :  { %v973_v40 = vmul.f32 %v971_v32, %v967_v24 }
 0xf02   :  { %v907_v8 = vpop.permute.xlu0 %906 }
 0xf03   :  { %v909_v19 = vmul.f32 %v907_v8, %v901_v42 }
 0xf05   :  { %911 = vrot.lane.b32.xlu2 %v909_v19, %s2164_s22 }
 0xf09   :  { %v976_v23 = vpop.permute.xlu1 %975 }
 0xf0a   :  { %v978_v25 = vmul.f32 %v976_v23, %v967_v24 }
 0xf0c   :  { %980 = vrot.lane.b32.xlu0 %v978_v25, %s2164_s22 }
 0xf5f   :  { %v912_v27 = vpop.permute.xlu2 %911 }
 0xf60   :  { %v2474_v29 = vadd.f32 %v912_v27, %v904_v26 }
 0xf62   :  { %2014 = vtanh.f32 %v2474_v29 }
 0xf68   :  { %v2015_v30 = vpop.eup %2014 }
 0xf69   :  { %917 = vrot.lane.b32.xlu1 %v2015_v30, %s2164_s22 }
 0xf7e   :  { %v981_v43 = vpop.permute.xlu0 %980 }
 0xf7f   :  { %v2479_v44 = vadd.f32 %v981_v43, %v973_v40  ;;  %v2509_v43 = vld [vmem:[%s2661_s2] sm:$0x3f]  ;;  %s2169_s2 = smov 68  }
 0xf81   :  { %2016 = vtanh.f32 %v2479_v44  ;;  %v1111_v21 = vrot.slane %v2479_v44, 6  ;;  %v2168_v44 = vmov 0  }
 0xf82   :  { %1912 = vset.pattern.permute.xlu2 %v2168_v44  ;;  %1913 = vset.pattern.permute.xlu0 %v2168_v44 }
 0xf87   :  { %v2017_v47 = vpop.eup %2016 }
 0xf88   :  { %986 = vrot.lane.b32.xlu2 %v2017_v47, %s2164_s22  ;;  %v2107_v47 = vld [vmem:[%s2659_s0 + $0x8] sm:$0xff]  ;;  %s2170_s0 = smov 56  }
 0xfdb   :  { %v918_v48 = vpop.permute.xlu1 %917 }
 0xfdc   :  { %v920_v31 = vmul.f32 %v918_v48, %v901_v42 }
 0xfde   :  { %v995_v49 = vrot.slane %v920_v31, 4 }
 0xfe0   :  { %996 = vrot.lane.b32.xlu1 %v995_v49, %s2166_s24 }
 0xfe2   :  { %v987_v50 = vpop.permute.xlu2 %986 }
 0xfe3   :  { %v989_v52 = vmul.f32 %v987_v50, %v967_v24  ;;  %v48_v50 = vld [vmem:[#allocation2 + $0x88] sm:$0xff] }
 0xfe4   :  { %1879 = vmatpush.msk.msrb.mxu0 %vm76_vm0, %v48_v50  ;;  %vm1219_vm0 = vcmask 293888  }
 0xfe5   :  { %v1061_v53 = vrot.slane %v989_v52, 4  ;;  %991 = vrot.lane.b32.xlu0 %v989_v52, %s2165_s23  ;;  %v47_v52 = vld [vmem:[#allocation2 + $0x80] sm:$0xff] }
 0xfe6   :  { %1237 = vmatpush.msrb.mxu0 %v47_v52 }
 0xfe7   :  { %1062 = vrot.lane.b32.xlu2 %v1061_v53, %s2165_s23  ;;  %v46_v53 = vld [vmem:[#allocation2 + $0x78] sm:$0xff] }
 0xfe8   :  { %1238 = vmatpush.msrb.mxu0 %v46_v53 }
0x1041   :  { %v1063_v46 = vpop.permute.xlu2 %1062 }
0x1042   :  { %1875 = vmatmul.msk.f32.vlgmr.msra.gmra.mxu1 %vm103_vm6, %v1063_v46  ;;  %v45_v46 = vld [vmem:[#allocation2 + $0x70] sm:$0xff] }
0x1043   :  { %1239 = vmatpush.msrb.mxu0 %v45_v46 }
0x1052   :  { %v997_v57 = vpop.permute.xlu1 %996 }
0x1057   :  { %v992_v41 = vpop.permute.xlu0 %991 }
0x1058   :  { %v999_v58 = vsel %vm103_vm6, %v992_v41, %v997_v57  ;;  %v44_v57 = vld [vmem:[#allocation2 + $0x68] sm:$0xff] }
0x1059   :  { %v1001_v59 = vrot.slane %v999_v58, 4  ;;  %1240 = vmatpush.msrb.mxu0 %v44_v57  ;;  %v64_v57 = vld [vmem:[#allocation2 + $0x108] sm:$0xff] }
0x105a   :  { %1306 = vmatpush.msrb.mxu1 %v64_v57 }
0x105b   :  { %1873 = vmatmul.msk.f32.vlgmr.msrb.gmra.mxu3 %vm171_vm7, %v1001_v59  ;;  %1456 = vmatpush.msra.mxu0 %v64_v57 }
0x10bf   :  { %v1083_v54 = vpop.f32.mrf.mxu1 }
0x10c0   :  { %v1087_v60 = vrot.slane %v1083_v54, 2 }
0x10c2   :  { %v1089_v61 = vadd.f32 %v1087_v60, %v2423_v4 }
0x10c4   :  { %2018 = vtanh.f32 %v1089_v61  ;;  %v1876_v6 = vmul.f32 -1.442695, %v1089_v61 }
0x10ca   :  { %v2019_v28 = vpop.eup %2018 }
0x10cb   :  { %1115 = vrot.lane.b32.xlu1 %v2019_v28, %s2164_s22 }
0x10de   :  { %v1021_v63 = vpop.f32.mrf.mxu3 }
0x10df   :  { %v1022_v2 = vadd.f32 %v1021_v63, %v2314_v45 }
0x10e1   :  { %2020 = vtanh.f32 %v1022_v2  ;;  %v1874_v12 = vmul.f32 -1.442695, %v1022_v2 }
0x10e2   :  { %2022 = vpow2.f32 %v1876_v6 }
0x10e7   :  { %v2021_v3 = vpop.eup %2020 }
0x10e8   :  { %1046 = vrot.lane.b32.xlu0 %v2021_v3, %s2164_s22  ;;  %v2023_v51 = vpop.eup %2022 }
0x10e9   :  { %v1093_v62 = vadd.f32 1.0, %v2023_v51  ;;  %v1216_v51 = vperm.slane %v2509_v43, 2 }
0x10eb   :  { %2024 = vrcp.f32 %v1093_v62  ;;  %v1105_v15 = vand.u32 2147483648, %v1093_v62  ;;  %vm1099_vm9 = vweird.f32 %v1093_v62  ;;  %v1103_v16 = vand.u32 2147483647, %v1093_v62 }
0x10ec   :  { %2026 = vpow2.f32 %v1874_v12 }
0x10ed   :  { %v1106_v0 = vor.u32 1.1754944e-38, %v1105_v15  ;;  %vm1104_vm11 = vcmp.eq.f32.partialorder %v1103_v16, 8.507059e+37 }
0x10f1   :  { %v2025_v9 = vpop.eup %2024 }
0x10f2   :  { %v1095_v11 = vmul.f32 %v2025_v9, %v1093_v62  ;;  %vm1100_vm8 = vweird.f32 %v2025_v9  ;;  %v2027_v55 = vpop.eup %2026 }
0x10f3   :  { %vm1101_vm10 = vmor %vm1099_vm9, %vm1100_vm8  ;;  %v1027_v17 = vadd.f32 1.0, %v2027_v55 }
0x10f4   :  { %v1096_v4 = vsub.f32 1.0, %v1095_v11 }
0x10f5   :  { %2028 = vrcp.f32 %v1027_v17  ;;  %v1039_v39 = vand.u32 2147483648, %v1027_v17  ;;  %vm1033_vm13 = vweird.f32 %v1027_v17  ;;  %v1037_v7 = vand.u32 2147483647, %v1027_v17 }
0x10f6   :  { %v1097_v13 = vmul.f32 %v2025_v9, %v1096_v4 }
0x10f7   :  { %v1040_v8 = vor.u32 1.1754944e-38, %v1039_v39  ;;  %vm1038_vm15 = vcmp.eq.f32.partialorder %v1037_v7, 8.507059e+37 }
0x10f8   :  { %v1098_v14 = vadd.f32 %v2025_v9, %v1097_v13 }
0x10fa   :  { %v1102_v18 = vsel %vm1101_vm10, %v2025_v9, %v1098_v14 }
0x10fb   :  { %v1107_v5 = vsel %vm1104_vm11, %v1106_v0, %v1102_v18  ;;  %v2029_v34 = vpop.eup %2028 }
0x10fc   :  { %v1029_v35 = vmul.f32 %v2029_v34, %v1027_v17  ;;  %vm1034_vm12 = vweird.f32 %v2029_v34  ;;  %v1113_v22 = vmul.f32 %v1111_v21, %v1107_v5 }
0x10fd   :  { %vm1035_vm14 = vmor %vm1033_vm13, %vm1034_vm12 }
0x10fe   :  { %v1030_v36 = vsub.f32 1.0, %v1029_v35 }
0x1100   :  { %v1031_v37 = vmul.f32 %v2029_v34, %v1030_v36 }
0x1102   :  { %v1032_v38 = vadd.f32 %v2029_v34, %v1031_v37 }
0x1104   :  { %v1036_v42 = vsel %vm1035_vm14, %v2029_v34, %v1032_v38 }
0x1105   :  { %v1041_v19 = vsel %vm1038_vm15, %v1040_v8, %v1036_v42 }
0x1106   :  { %v1044_v24 = vmul.f32 %v1041_v19, %v2474_v29  ;;  %v2512_v29 = vperm.slane %v2509_v43, 5 }
0x113d   :  { %v1116_v1 = vpop.permute.xlu1 %1115 }
0x113e   :  { %v1118_v33 = vmul.f32 %v1116_v1, %v1107_v5 }
0x1140   :  { %1120 = vrot.lane.b32.xlu0 %v1118_v33, %s2164_s22 }
0x115a   :  { %v1047_v56 = vpop.permute.xlu0 %1046 }
0x115b   :  { %v1049_v20 = vmul.f32 %v1047_v56, %v1041_v19 }
0x115d   :  { %1051 = vrot.lane.b32.xlu2 %v1049_v20, %s2164_s22 }
0x11b2   :  { %v1121_v10 = vpop.permute.xlu0 %1120 }
0x11b3   :  { %v2496_v23 = vadd.f32 %v1121_v10, %v1113_v22 }
0x11b5   :  { %2030 = vtanh.f32 %v2496_v23 }
0x11b7   :  { %v1052_v25 = vpop.permute.xlu2 %1051 }
0x11b8   :  { %v2500_v26 = vadd.f32 %v1052_v25, %v1044_v24 }
0x11ba   :  { %2032 = vtanh.f32 %v2500_v26 }
0x11bb   :  { %v2031_v27 = vpop.eup %2030 }
0x11bc   :  { %1126 = vrot.lane.b32.xlu2 %v2031_v27, %s2164_s22 }
0x11c0   :  { %v2033_v30 = vpop.eup %2032 }
0x11c1   :  { %1057 = vrot.lane.b32.xlu1 %v2033_v30, %s2164_s22 }
0x11c4   :  { %1202 = vperm.xlu2 %1912, %v2107_v47  }
0x1216   :  { %v1127_v32 = vpop.permute.xlu2 %1126 }
0x1217   :  { %v1129_v40 = vmul.f32 %v1127_v32, %v1107_v5 }
0x1219   :  { %1131 = vrot.lane.b32.xlu0 %v1129_v40, %s2165_s23 }
0x121e   :  { %v1203_v58 = vpop.permute.xlu2 %1202 }
0x121f   :  { %v1206_v60 = vmul.f32 %v2512_v29, %v1203_v58  ;;  %v62_v58 = vld [vmem:[#allocation2 + $0xf8] sm:$0xff] }
0x1221   :  { %1208 = vrot.lane.b32.xlu0 %v2512_v29, %s2167_s29 }
0x1233   :  { %v1058_v48 = vpop.permute.xlu1 %1057 }
0x1234   :  { %v1060_v31 = vmul.f32 %v1058_v48, %v1041_v19 }
0x1236   :  { %v1135_v49 = vrot.slane %v1060_v31, 2 }
0x1238   :  { %1136 = vrot.lane.b32.xlu1 %v1135_v49, %s2166_s24 }
0x1240   :  { %1212 = vrot.lane.b32.xlu1 %v1129_v40, %s2169_s2  ;;  %v1266_v40 = vrot.slane %v2496_v23, 6 }
0x128b   :  { %v1132_v41 = vpop.permute.xlu0 %1131 }
0x1293   :  { %v1209_v28 = vpop.permute.xlu0 %1208 }
0x1294   :  { %v1211_v63 = vadd.f32 %v1209_v28, %v1206_v60  ;;  %v59_v60 = vld [vmem:[#allocation2 + $0xe0] sm:$0xff]  ;;  %v57_v28 = vld [vmem:[#allocation2 + $0xd0] sm:$0xff] }
0x12aa   :  { %v1137_v59 = vpop.permute.xlu1 %1136 }
0x12ab   :  { %v1139_v54 = vsel %vm103_vm6, %v1132_v41, %v1137_v59  ;;  %v63_v41 = vld [vmem:[#allocation2 + $0x100] sm:$0xff]  ;;  %v61_v59 = vld [vmem:[#allocation2 + $0xf0] sm:$0xff] }
0x12ac   :  { %v1141_v61 = vrot.slane %v1139_v54, 6  ;;  %1307 = vmatpush.msrb.mxu1 %v63_v41  ;;  %1457 = vmatpush.msra.mxu0 %v63_v41  ;;  %v60_v54 = vld [vmem:[#allocation2 + $0xe8] sm:$0xff] }
0x12ae   :  { %1877 = vmatmul.msk.f32.vlgmr.msra.gmra.mxu2 %vm171_vm7, %v1141_v61  ;;  %1308 = vmatpush.msrb.mxu1 %v62_v58  ;;  %v58_v61 = vld [vmem:[#allocation2 + $0xd8] sm:$0xff] }
0x12af   :  { %1458 = vmatpush.msra.mxu0 %v62_v58 }
0x12b0   :  { %1309 = vmatpush.msrb.mxu1 %v61_v59 }
0x12b1   :  { %1459 = vmatpush.msra.mxu0 %v61_v59 }
0x12b2   :  { %v1213_v2 = vpop.permute.xlu1 %1212  ;;  %1310 = vmatpush.msrb.mxu1 %v60_v54 }
0x12b3   :  { %v1215_v3 = vsel %vm69_vm1, %v1211_v63, %v1213_v2  ;;  %1460 = vmatpush.msra.mxu0 %v60_v54 }
0x12b4   :  { %v1218_v6 = vrot.slane %v1215_v3, 6  ;;  %1311 = vmatpush.msrb.mxu1 %v59_v60 }
0x12b5   :  { %1461 = vmatpush.msra.mxu0 %v59_v60 }
0x12b6   :  { %1880 = vmatmul.msk.f32.vlgmr.msrb.gmra.mxu0 %vm1219_vm0, %v1218_v6  ;;  %1312 = vmatpush.msrb.mxu1 %v58_v61  ;;  %v2548_v6 = vperm.slane %v2509_v43, 4 }
0x12b7   :  { %1462 = vmatpush.msra.mxu0 %v58_v61 }
0x12b8   :  { %1313 = vmatpush.msrb.mxu1 %v57_v28 }
0x12b9   :  { %1463 = vmatpush.msra.mxu0 %v57_v28 }
0x12ba   :  { %1601 = vmatpush.msra.mxu1 %v64_v57 }
0x12bb   :  { %1746 = vmatpush.msrb.mxu0 %v64_v57 }
0x12bc   :  { %1602 = vmatpush.msra.mxu1 %v63_v41 }
0x12bd   :  { %1747 = vmatpush.msrb.mxu0 %v63_v41 }
0x12be   :  { %1603 = vmatpush.msra.mxu1 %v62_v58 }
0x12bf   :  { %1748 = vmatpush.msrb.mxu0 %v62_v58 }
0x12c0   :  { %1604 = vmatpush.msra.mxu1 %v61_v59 }
0x12c1   :  { %1749 = vmatpush.msrb.mxu0 %v61_v59 }
0x12c2   :  { %1605 = vmatpush.msra.mxu1 %v60_v54 }
0x12c3   :  { %1750 = vmatpush.msrb.mxu0 %v60_v54 }
0x12c4   :  { %1606 = vmatpush.msra.mxu1 %v59_v60 }
0x12c5   :  { %1751 = vmatpush.msrb.mxu0 %v59_v60 }
0x12c6   :  { %1607 = vmatpush.msra.mxu1 %v58_v61 }
0x12c7   :  { %1752 = vmatpush.msrb.mxu0 %v58_v61 }
0x12c8   :  { %1608 = vmatpush.msra.mxu1 %v57_v28 }
0x12c9   :  { %1753 = vmatpush.msrb.mxu0 %v57_v28 }
0x1331   :  { %v1161_v62 = vpop.f32.mrf.mxu2 }
0x1332   :  { %v1162_v9 = vadd.f32 %v1161_v62, %v2314_v45 }
0x1333   :  { %v1242_v11 = vpop.f32.mrf.mxu0 }
0x1334   :  { %2034 = vtanh.f32 %v1162_v9  ;;  %v1243_v12 = vadd.f32 %v1242_v11, %v1216_v51  ;;  %v1878_v14 = vmul.f32 -1.442695, %v1162_v9 }
0x1336   :  { %2036 = vtanh.f32 %v1243_v12  ;;  %v1881_v18 = vmul.f32 -1.442695, %v1243_v12 }
0x1337   :  { %2038 = vpow2.f32 %v1878_v14 }
0x133a   :  { %v2035_v4 = vpop.eup %2034 }
0x133b   :  { %1186 = vrot.lane.b32.xlu2 %v2035_v4, %s2164_s22 }
0x133c   :  { %v2037_v13 = vpop.eup %2036 }
0x133d   :  { %1270 = vrot.lane.b32.xlu0 %v2037_v13, %s2164_s22  ;;  %v2039_v55 = vpop.eup %2038 }
0x133e   :  { %v1167_v15 = vadd.f32 1.0, %v2039_v55 }
0x1340   :  { %2040 = vrcp.f32 %v1167_v15  ;;  %v1179_v33 = vand.u32 2147483648, %v1167_v15  ;;  %vm1173_vm2 = vweird.f32 %v1167_v15  ;;  %v1177_v35 = vand.u32 2147483647, %v1167_v15 }
0x1341   :  { %2042 = vpow2.f32 %v1881_v18 }
0x1342   :  { %v1180_v37 = vor.u32 1.1754944e-38, %v1179_v33  ;;  %vm1178_vm4 = vcmp.eq.f32.partialorder %v1177_v35, 8.507059e+37 }
0x1346   :  { %v2041_v16 = vpop.eup %2040 }
0x1347   :  { %v1169_v17 = vmul.f32 %v2041_v16, %v1167_v15  ;;  %v2043_v1 = vpop.eup %2042  ;;  %vm1174_vm1 = vweird.f32 %v2041_v16 }
0x1348   :  { %v1248_v34 = vadd.f32 1.0, %v2043_v1  ;;  %vm1175_vm3 = vmor %vm1173_vm2, %vm1174_vm1 }
0x1349   :  { %v1170_v0 = vsub.f32 1.0, %v1169_v17 }
0x134a   :  { %2044 = vrcp.f32 %v1248_v34  ;;  %v1260_v21 = vand.u32 2147483648, %v1248_v34  ;;  %vm1254_vm8 = vweird.f32 %v1248_v34  ;;  %v1258_v22 = vand.u32 2147483647, %v1248_v34 }
0x134b   :  { %v1171_v45 = vmul.f32 %v2041_v16, %v1170_v0 }
0x134c   :  { %v1261_v24 = vor.u32 1.1754944e-38, %v1260_v21  ;;  %vm1259_vm10 = vcmp.eq.f32.partialorder %v1258_v22, 8.507059e+37  ;;  %v49_v22 = vld [vmem:[#allocation2 + $0x90] sm:$0xff] }
0x134d   :  { %v1172_v5 = vadd.f32 %v2041_v16, %v1171_v45 }
0x134f   :  { %v1176_v36 = vsel %vm1175_vm3, %v2041_v16, %v1172_v5 }
0x1350   :  { %v1181_v38 = vsel %vm1178_vm4, %v1180_v37, %v1176_v36  ;;  %v2045_v42 = vpop.eup %2044 }
0x1351   :  { %v1250_v8 = vmul.f32 %v2045_v42, %v1248_v34  ;;  %vm1255_vm5 = vweird.f32 %v2045_v42  ;;  %v1184_v32 = vmul.f32 %v1181_v38, %v2500_v26 }
0x1352   :  { %vm1256_vm9 = vmor %vm1254_vm8, %vm1255_vm5 }
0x1353   :  { %v1251_v56 = vsub.f32 1.0, %v1250_v8  ;;  %v52_v8 = vld [vmem:[#allocation2 + $0xa8] sm:$0xff] }
0x1355   :  { %v1252_v19 = vmul.f32 %v2045_v42, %v1251_v56  ;;  %v51_v56 = vld [vmem:[#allocation2 + $0xa0] sm:$0xff] }
0x1357   :  { %v1253_v20 = vadd.f32 %v2045_v42, %v1252_v19  ;;  %v50_v19 = vld [vmem:[#allocation2 + $0x98] sm:$0xff] }
0x1359   :  { %v1257_v10 = vsel %vm1256_vm9, %v2045_v42, %v1253_v20  ;;  %v53_v42 = vld [vmem:[#allocation2 + $0xb0] sm:$0xff] }
0x135a   :  { %v1262_v27 = vsel %vm1259_vm10, %v1261_v24, %v1257_v10 }
0x135b   :  { %v1268_v48 = vmul.f32 %v1266_v40, %v1262_v27 }
0x1395   :  { %v1187_v39 = vpop.permute.xlu2 %1186 }
0x1396   :  { %v1189_v7 = vmul.f32 %v1187_v39, %v1181_v38  ;;  %v55_v39 = vld [vmem:[#allocation2 + $0xc0] sm:$0xff] }
0x1398   :  { %1191 = vrot.lane.b32.xlu1 %v1189_v7, %s2164_s22  ;;  %v54_v7 = vld [vmem:[#allocation2 + $0xb8] sm:$0xff] }
0x13af   :  { %v1271_v25 = vpop.permute.xlu0 %1270 }
0x13b0   :  { %v1273_v30 = vmul.f32 %v1271_v25, %v1262_v27 }
0x13b2   :  { %1275 = vrot.lane.b32.xlu2 %v1273_v30, %s2164_s22 }
0x140a   :  { %v1192_v44 = vpop.permute.xlu1 %1191 }
0x140b   :  { %v2532_v47 = vadd.f32 %v1192_v44, %v1184_v32 }
0x140c   :  { %v1276_v31 = vpop.permute.xlu2 %1275 }
0x140d   :  { %2046 = vtanh.f32 %v2532_v47  ;;  %v2535_v49 = vadd.f32 %v1276_v31, %v1268_v48 }
0x140f   :  { %2048 = vtanh.f32 %v2535_v49 }
0x1413   :  { %v2047_v50 = vpop.eup %2046 }
0x1414   :  { %1197 = vrot.lane.b32.xlu0 %v2047_v50, %s2164_s22 }
0x1415   :  { %v2049_v52 = vpop.eup %2048 }
0x1416   :  { %1281 = vrot.lane.b32.xlu1 %v2049_v52, %s2164_s22 }
0x1486   :  { %v1198_v26 = vpop.permute.xlu0 %1197 }
0x1487   :  { %v1200_v53 = vmul.f32 %v1198_v26, %v1181_v38  ;;  %v56_v38 = vld [vmem:[#allocation2 + $0xc8] sm:$0xff] }
0x1488   :  { %v1282_v23 = vpop.permute.xlu1 %1281  ;;  %1388 = vmatpush.msra.mxu3 %v56_v38  ;;  %1533 = vmatpush.msrb.mxu2 %v56_v38 }
0x1489   :  { %1290 = vrot.lane.b32.xlu0 %v1200_v53, %s2166_s24  ;;  %v2541_v46 = vmul.f32 %v1282_v23, %v1262_v27  ;;  %v2567_v27 = vperm.slane %v2509_v43, 3 }
0x148a   :  { %1389 = vmatpush.msra.mxu3 %v55_v39  ;;  %1534 = vmatpush.msrb.mxu2 %v55_v39 }
0x148b   :  { %1286 = vrot.lane.b32.xlu2 %v2541_v46, %s2165_s23 }
0x148c   :  { %1390 = vmatpush.msra.mxu3 %v54_v7  ;;  %1535 = vmatpush.msrb.mxu2 %v54_v7 }
0x148e   :  { %1391 = vmatpush.msra.mxu3 %v53_v42  ;;  %1536 = vmatpush.msrb.mxu2 %v53_v42 }
0x1490   :  { %1392 = vmatpush.msra.mxu3 %v52_v8  ;;  %1537 = vmatpush.msrb.mxu2 %v52_v8 }
0x1492   :  { %1393 = vmatpush.msra.mxu3 %v51_v56  ;;  %1538 = vmatpush.msrb.mxu2 %v51_v56 }
0x1494   :  { %1394 = vmatpush.msra.mxu3 %v50_v19  ;;  %1539 = vmatpush.msrb.mxu2 %v50_v19 }
0x1496   :  { %1395 = vmatpush.msra.mxu3 %v49_v22  ;;  %1540 = vmatpush.msrb.mxu2 %v49_v22 }
0x1498   :  { %1678 = vmatpush.msrb.mxu3 %v56_v38 }
0x149a   :  { %1679 = vmatpush.msrb.mxu3 %v55_v39 }
0x149c   :  { %1680 = vmatpush.msrb.mxu3 %v54_v7 }
0x149e   :  { %1681 = vmatpush.msrb.mxu3 %v53_v42 }
0x14a0   :  { %1682 = vmatpush.msrb.mxu3 %v52_v8 }
0x14a2   :  { %1683 = vmatpush.msrb.mxu3 %v51_v56 }
0x14a4   :  { %1684 = vmatpush.msrb.mxu3 %v50_v19 }
0x14a6   :  { %1685 = vmatpush.msrb.mxu3 %v49_v22 }
0x14e5   :  { %v1287_v63 = vpop.permute.xlu2 %1286 }
0x14fb   :  { %v1291_v2 = vpop.permute.xlu0 %1290 }
0x14fc   :  { %v1293_v3 = vsel %vm103_vm6, %v1287_v63, %v1291_v2 }
0x14fd   :  { %1882 = vmatmul.msk.f32.vlgmr.msrb.gmra.mxu1 %vm171_vm7, %v1293_v3 }
0x157a   :  { %v1315_v51 = vpop.f32.mrf.mxu1 }
0x157b   :  { %v1316_v62 = vadd.f32 %v1315_v51, %v2548_v6 }
0x157d   :  { %2050 = vtanh.f32 %v1316_v62  ;;  %v1883_v11 = vmul.f32 -1.442695, %v1316_v62 }
0x157f   :  { %2052 = vpow2.f32 %v1883_v11 }
0x1583   :  { %v2051_v9 = vpop.eup %2050 }
0x1584   :  { %1340 = vrot.lane.b32.xlu1 %v2051_v9, %s2164_s22 }
0x1585   :  { %v2053_v12 = vpop.eup %2052 }
0x1586   :  { %v1321_v4 = vadd.f32 1.0, %v2053_v12 }
0x1588   :  { %2054 = vrcp.f32 %v1321_v4  ;;  %v1333_v17 = vand.u32 2147483648, %v1321_v4  ;;  %vm1327_vm12 = vweird.f32 %v1321_v4  ;;  %v1331_v18 = vand.u32 2147483647, %v1321_v4 }
0x158a   :  { %v1334_v45 = vor.u32 1.1754944e-38, %v1333_v17  ;;  %vm1332_vm14 = vcmp.eq.f32.partialorder %v1331_v18, 8.507059e+37 }
0x158e   :  { %v2055_v13 = vpop.eup %2054 }
0x158f   :  { %v1323_v14 = vmul.f32 %v2055_v13, %v1321_v4  ;;  %vm1328_vm11 = vweird.f32 %v2055_v13 }
0x1590   :  { %vm1329_vm13 = vmor %vm1327_vm12, %vm1328_vm11 }
0x1591   :  { %v1324_v55 = vsub.f32 1.0, %v1323_v14 }
0x1593   :  { %v1325_v15 = vmul.f32 %v2055_v13, %v1324_v55 }
0x1595   :  { %v1326_v16 = vadd.f32 %v2055_v13, %v1325_v15 }
0x1597   :  { %v1330_v0 = vsel %vm1329_vm13, %v2055_v13, %v1326_v16 }
0x1598   :  { %v1335_v5 = vsel %vm1332_vm14, %v1334_v45, %v1330_v0 }
0x1599   :  { %v1338_v34 = vmul.f32 %v1335_v5, %v2532_v47 }
0x15f6   :  { %v1341_v1 = vpop.permute.xlu1 %1340 }
0x15f7   :  { %v1343_v33 = vmul.f32 %v1341_v1, %v1335_v5 }
0x15f9   :  { %1345 = vrot.lane.b32.xlu2 %v1343_v33, %s2164_s22 }
0x1601   :  { %1372 = vrot.lane.b32.xlu2 %v2541_v46, %s2166_s24 }
0x1653   :  { %v1346_v35 = vpop.permute.xlu2 %1345 }
0x1654   :  { %v2556_v36 = vadd.f32 %v1346_v35, %v1338_v34 }
0x1656   :  { %2056 = vtanh.f32 %v2556_v36 }
0x165b   :  { %v1373_v10 = vpop.permute.xlu2 %1372 }
0x165c   :  { %v2057_v37 = vpop.eup %2056 }
0x165d   :  { %1351 = vrot.lane.b32.xlu0 %v2057_v37, %s2164_s22 }
0x16cf   :  { %v1352_v20 = vpop.permute.xlu0 %1351 }
0x16d0   :  { %v2560_v21 = vmul.f32 %v1352_v20, %v1335_v5 }
0x16d2   :  { %1369 = vrot.lane.b32.xlu1 %v2560_v21, %s2165_s23 }
0x1744   :  { %v1370_v24 = vpop.permute.xlu1 %1369 }
0x1745   :  { %v1375_v25 = vsel %vm103_vm6, %v1370_v24, %v1373_v10 }
0x1746   :  { %1884 = vmatmul.msk.f32.vlgmr.msra.gmra.mxu3 %vm171_vm7, %v1375_v25 }
0x17c9   :  { %v1397_v30 = vpop.f32.mrf.mxu3 }
0x17ca   :  { %v1398_v32 = vadd.f32 %v1397_v30, %v2567_v27 }
0x17cc   :  { %2058 = vtanh.f32 %v1398_v32  ;;  %v1885_v44 = vmul.f32 -1.442695, %v1398_v32 }
0x17ce   :  { %2060 = vpow2.f32 %v1885_v44 }
0x17d2   :  { %v2059_v40 = vpop.eup %2058 }
0x17d3   :  { %1422 = vrot.lane.b32.xlu0 %v2059_v40, %s2164_s22 }
0x17d4   :  { %v2061_v47 = vpop.eup %2060 }
0x17d5   :  { %v1403_v48 = vadd.f32 1.0, %v2061_v47 }
0x17d7   :  { %2062 = vrcp.f32 %v1403_v48  ;;  %v1415_v43 = vand.u32 2147483648, %v1403_v48  ;;  %vm1409_vm0 = vweird.f32 %v1403_v48  ;;  %v1413_v23 = vand.u32 2147483647, %v1403_v48 }
0x17d9   :  { %v1416_v57 = vor.u32 1.1754944e-38, %v1415_v43  ;;  %vm1414_vm2 = vcmp.eq.f32.partialorder %v1413_v23, 8.507059e+37 }
0x17dd   :  { %v2063_v31 = vpop.eup %2062 }
0x17de   :  { %v1405_v50 = vmul.f32 %v2063_v31, %v1403_v48  ;;  %vm1410_vm15 = vweird.f32 %v2063_v31 }
0x17df   :  { %vm1411_vm1 = vmor %vm1409_vm0, %vm1410_vm15 }
0x17e0   :  { %v1406_v52 = vsub.f32 1.0, %v1405_v50 }
0x17e2   :  { %v1407_v26 = vmul.f32 %v2063_v31, %v1406_v52 }
0x17e4   :  { %v1408_v53 = vadd.f32 %v2063_v31, %v1407_v26 }
0x17e6   :  { %v1412_v46 = vsel %vm1411_vm1, %v2063_v31, %v1408_v53 }
0x17e7   :  { %v1417_v58 = vsel %vm1414_vm2, %v1416_v57, %v1412_v46 }
0x17e8   :  { %v1420_v54 = vmul.f32 %v1417_v58, %v2535_v49 }
0x1845   :  { %v1423_v41 = vpop.permute.xlu0 %1422 }
0x1846   :  { %v1425_v59 = vmul.f32 %v1423_v41, %v1417_v58 }
0x1848   :  { %1427 = vrot.lane.b32.xlu1 %v1425_v59, %s2164_s22 }
0x1850   :  { %1441 = vrot.lane.b32.xlu1 %v2560_v21, %s2166_s24 }
0x18ba   :  { %v1428_v60 = vpop.permute.xlu1 %1427 }
0x18bb   :  { %v2575_v61 = vadd.f32 %v1428_v60, %v1420_v54 }
0x18bd   :  { %2064 = vtanh.f32 %v2575_v61 }
0x18c2   :  { %v1442_v3 = vpop.permute.xlu1 %1441 }
0x18c3   :  { %v2065_v28 = vpop.eup %2064 }
0x18c4   :  { %1433 = vrot.lane.b32.xlu2 %v2065_v28, %s2164_s22 }
0x191e   :  { %v1434_v63 = vpop.permute.xlu2 %1433 }
0x191f   :  { %v1436_v2 = vmul.f32 %v1434_v63, %v1417_v58 }
0x1921   :  { %1438 = vrot.lane.b32.xlu0 %v1436_v2, %s2165_s23 }
0x1993   :  { %v1439_v51 = vpop.permute.xlu0 %1438 }
0x1994   :  { %v1444_v62 = vsel %vm103_vm6, %v1439_v51, %v1442_v3 }
0x1995   :  { %1886 = vmatmul.msk.f32.vlgmr.msra.gmra.mxu0 %vm171_vm7, %v1444_v62 }
0x1a12   :  { %v1465_v9 = vpop.f32.mrf.mxu0 }
0x1a13   :  { %v1466_v49 = vadd.f32 %v1465_v9, %v2548_v6 }
0x1a15   :  { %2066 = vtanh.f32 %v1466_v49  ;;  %v1887_v12 = vmul.f32 -1.442695, %v1466_v49 }
0x1a17   :  { %2068 = vpow2.f32 %v1887_v12 }
0x1a1b   :  { %v2067_v11 = vpop.eup %2066 }
0x1a1c   :  { %1490 = vrot.lane.b32.xlu2 %v2067_v11, %s2164_s22 }
0x1a1d   :  { %v2069_v4 = vpop.eup %2068 }
0x1a1e   :  { %v1471_v13 = vadd.f32 1.0, %v2069_v4 }
0x1a20   :  { %2070 = vrcp.f32 %v1471_v13  ;;  %v1483_v18 = vand.u32 2147483648, %v1471_v13  ;;  %vm1477_vm4 = vweird.f32 %v1471_v13  ;;  %v1481_v0 = vand.u32 2147483647, %v1471_v13 }
0x1a22   :  { %v1484_v1 = vor.u32 1.1754944e-38, %v1483_v18  ;;  %vm1482_vm8 = vcmp.eq.f32.partialorder %v1481_v0, 8.507059e+37 }
0x1a26   :  { %v2071_v14 = vpop.eup %2070 }
0x1a27   :  { %v1473_v55 = vmul.f32 %v2071_v14, %v1471_v13  ;;  %vm1478_vm3 = vweird.f32 %v2071_v14 }
0x1a28   :  { %vm1479_vm5 = vmor %vm1477_vm4, %vm1478_vm3 }
0x1a29   :  { %v1474_v15 = vsub.f32 1.0, %v1473_v55 }
0x1a2b   :  { %v1475_v16 = vmul.f32 %v2071_v14, %v1474_v15 }
0x1a2d   :  { %v1476_v17 = vadd.f32 %v2071_v14, %v1475_v16 }
0x1a2f   :  { %v1480_v45 = vsel %vm1479_vm5, %v2071_v14, %v1476_v17 }
0x1a30   :  { %v1485_v33 = vsel %vm1482_vm8, %v1484_v1, %v1480_v45 }
0x1a31   :  { %v1488_v35 = vmul.f32 %v1485_v33, %v2556_v36 }
0x1a76   :  { %v1491_v5 = vpop.permute.xlu2 %1490 }
0x1a77   :  { %v1493_v34 = vmul.f32 %v1491_v5, %v1485_v33 }
0x1a79   :  { %1495 = vrot.lane.b32.xlu0 %v1493_v34, %s2164_s22 }
0x1a81   :  { %1518 = vrot.lane.b32.xlu0 %v1436_v2, %s2166_s24 }
0x1aeb   :  { %v1496_v37 = vpop.permute.xlu0 %1495 }
0x1aec   :  { %v2587_v38 = vadd.f32 %v1496_v37, %v1488_v35 }
0x1aee   :  { %2072 = vtanh.f32 %v2587_v38 }
0x1af3   :  { %v1519_v8 = vpop.permute.xlu0 %1518 }
0x1af4   :  { %v2073_v39 = vpop.eup %2072 }
0x1af5   :  { %1501 = vrot.lane.b32.xlu1 %v2073_v39, %s2164_s22 }
0x1b67   :  { %v1502_v7 = vpop.permute.xlu1 %1501 }
0x1b68   :  { %v2591_v42 = vmul.f32 %v1502_v7, %v1485_v33 }
0x1b6a   :  { %1515 = vrot.lane.b32.xlu2 %v2591_v42, %s2165_s23 }
0x1bc4   :  { %v1516_v56 = vpop.permute.xlu2 %1515 }
0x1bc5   :  { %v1521_v19 = vsel %vm103_vm6, %v1516_v56, %v1519_v8 }
0x1bc6   :  { %1888 = vmatmul.msk.f32.vlgmr.msrb.gmra.mxu2 %vm171_vm7, %v1521_v19 }
0x1c49   :  { %v1542_v36 = vpop.f32.mrf.mxu2 }
0x1c4a   :  { %v1543_v20 = vadd.f32 %v1542_v36, %v2567_v27 }
0x1c4c   :  { %2074 = vtanh.f32 %v1543_v20  ;;  %v1889_v10 = vmul.f32 -1.442695, %v1543_v20 }
0x1c4e   :  { %2076 = vpow2.f32 %v1889_v10 }
0x1c52   :  { %v2075_v22 = vpop.eup %2074 }
0x1c53   :  { %1567 = vrot.lane.b32.xlu1 %v2075_v22, %s2164_s22 }
0x1c54   :  { %v2077_v24 = vpop.eup %2076 }
0x1c55   :  { %v1548_v25 = vadd.f32 1.0, %v2077_v24 }
0x1c57   :  { %2078 = vrcp.f32 %v1548_v25  ;;  %v1560_v48 = vand.u32 2147483648, %v1548_v25  ;;  %vm1554_vm10 = vweird.f32 %v1548_v25  ;;  %v1558_v31 = vand.u32 2147483647, %v1548_v25 }
0x1c59   :  { %v1561_v52 = vor.u32 1.1754944e-38, %v1560_v48  ;;  %vm1559_vm12 = vcmp.eq.f32.partialorder %v1558_v31, 8.507059e+37 }
0x1c5d   :  { %v2079_v30 = vpop.eup %2078 }
0x1c5e   :  { %v1550_v32 = vmul.f32 %v2079_v30, %v1548_v25  ;;  %vm1555_vm9 = vweird.f32 %v2079_v30 }
0x1c5f   :  { %vm1556_vm11 = vmor %vm1554_vm10, %vm1555_vm9  ;;  %vm1363_vm9 = vcmask 254976   ;;  %vm1820_vm10 = vcmask 7168  }
0x1c60   :  { %v1551_v40 = vsub.f32 1.0, %v1550_v32 }
0x1c62   :  { %v1552_v44 = vmul.f32 %v2079_v30, %v1551_v40 }
0x1c64   :  { %v1553_v47 = vadd.f32 %v2079_v30, %v1552_v44 }
0x1c66   :  { %v1557_v50 = vsel %vm1556_vm11, %v2079_v30, %v1553_v47  ;;  %vm1822_vm11 = vcmask 15360  }
0x1c67   :  { %v1562_v53 = vsel %vm1559_vm12, %v1561_v52, %v1557_v50  ;;  %vm1824_vm12 = vcmask 23552  }
0x1c68   :  { %v1565_v23 = vmul.f32 %v1562_v53, %v2575_v61 }
0x1cc5   :  { %v1568_v26 = vpop.permute.xlu1 %1567 }
0x1cc6   :  { %v1570_v43 = vmul.f32 %v1568_v26, %v1562_v53 }
0x1cc8   :  { %1572 = vrot.lane.b32.xlu2 %v1570_v43, %s2164_s22 }
0x1cd0   :  { %1586 = vrot.lane.b32.xlu2 %v2591_v42, %s2166_s24 }
0x1d22   :  { %v1573_v46 = vpop.permute.xlu2 %1572 }
0x1d23   :  { %v2603_v57 = vadd.f32 %v1573_v46, %v1565_v23 }
0x1d25   :  { %2080 = vtanh.f32 %v2603_v57 }
0x1d2a   :  { %v1587_v54 = vpop.permute.xlu2 %1586 }
0x1d2b   :  { %v2081_v41 = vpop.eup %2080 }
0x1d2c   :  { %1578 = vrot.lane.b32.xlu0 %v2081_v41, %s2164_s22 }
0x1d9e   :  { %v1579_v58 = vpop.permute.xlu0 %1578 }
0x1d9f   :  { %v1581_v59 = vmul.f32 %v1579_v58, %v1562_v53 }
0x1da1   :  { %1583 = vrot.lane.b32.xlu1 %v1581_v59, %s2165_s23 }
0x1e13   :  { %v1584_v60 = vpop.permute.xlu1 %1583 }
0x1e14   :  { %v1589_v28 = vsel %vm103_vm6, %v1584_v60, %v1587_v54 }
0x1e15   :  { %1890 = vmatmul.msk.f32.vlgmr.msra.gmra.mxu1 %vm171_vm7, %v1589_v28 }
0x1e92   :  { %v1610_v63 = vpop.f32.mrf.mxu1 }
0x1e93   :  { %v1611_v61 = vadd.f32 %v1610_v63, %v2548_v6 }
0x1e95   :  { %2082 = vtanh.f32 %v1611_v61  ;;  %v1891_v3 = vmul.f32 -1.442695, %v1611_v61 }
0x1e97   :  { %2084 = vpow2.f32 %v1891_v3 }
0x1e9b   :  { %v2083_v2 = vpop.eup %2082 }
0x1e9c   :  { %1635 = vrot.lane.b32.xlu0 %v2083_v2, %s2164_s22 }
0x1e9d   :  { %v2085_v51 = vpop.eup %2084 }
0x1e9e   :  { %v1616_v62 = vadd.f32 1.0, %v2085_v51 }
0x1ea0   :  { %2086 = vrcp.f32 %v1616_v62  ;;  %v1628_v13 = vand.u32 2147483648, %v1616_v62  ;;  %vm1622_vm14 = vweird.f32 %v1616_v62  ;;  %v1626_v14 = vand.u32 2147483647, %v1616_v62 }
0x1ea2   :  { %v1629_v15 = vor.u32 1.1754944e-38, %v1628_v13  ;;  %vm1627_vm0 = vcmp.eq.f32.partialorder %v1626_v14, 8.507059e+37 }
0x1ea6   :  { %v2087_v9 = vpop.eup %2086 }
0x1ea7   :  { %v1618_v49 = vmul.f32 %v2087_v9, %v1616_v62  ;;  %vm1623_vm13 = vweird.f32 %v2087_v9 }
0x1ea8   :  { %vm1624_vm15 = vmor %vm1622_vm14, %vm1623_vm13  ;;  %vm1826_vm13 = vcmask 25600  }
0x1ea9   :  { %v1619_v11 = vsub.f32 1.0, %v1618_v49 }
0x1eab   :  { %v1620_v12 = vmul.f32 %v2087_v9, %v1619_v11 }
0x1ead   :  { %v1621_v4 = vadd.f32 %v2087_v9, %v1620_v12 }
0x1eaf   :  { %v1625_v55 = vsel %vm1624_vm15, %v2087_v9, %v1621_v4 }
0x1eb0   :  { %v1630_v17 = vsel %vm1627_vm0, %v1629_v15, %v1625_v55 }
0x1eb1   :  { %v1633_v0 = vmul.f32 %v1630_v17, %v2587_v38 }
0x1f0e   :  { %v1636_v16 = vpop.permute.xlu0 %1635 }
0x1f0f   :  { %v1638_v18 = vmul.f32 %v1636_v16, %v1630_v17 }
0x1f11   :  { %1640 = vrot.lane.b32.xlu1 %v1638_v18, %s2164_s22 }
0x1f19   :  { %1663 = vrot.lane.b32.xlu1 %v1581_v59, %s2166_s24 }
0x1f83   :  { %v1641_v45 = vpop.permute.xlu1 %1640 }
0x1f84   :  { %v2615_v1 = vadd.f32 %v1641_v45, %v1633_v0 }
0x1f86   :  { %2088 = vtanh.f32 %v2615_v1 }
0x1f8b   :  { %v1664_v35 = vpop.permute.xlu1 %1663 }
0x1f8c   :  { %v2089_v5 = vpop.eup %2088 }
0x1f8d   :  { %1646 = vrot.lane.b32.xlu2 %v2089_v5, %s2164_s22 }
0x1fe7   :  { %v1647_v33 = vpop.permute.xlu2 %1646 }
0x1fe8   :  { %v2619_v34 = vmul.f32 %v1647_v33, %v1630_v17 }
0x1fea   :  { %1660 = vrot.lane.b32.xlu0 %v2619_v34, %s2165_s23 }
0x205c   :  { %v1661_v37 = vpop.permute.xlu0 %1660 }
0x205d   :  { %v1666_v39 = vsel %vm103_vm6, %v1661_v37, %v1664_v35 }
0x205e   :  { %1892 = vmatmul.msk.f32.vlgmr.msrb.gmra.mxu3 %vm171_vm7, %v1666_v39 }
0x20e1   :  { %v1687_v38 = vpop.f32.mrf.mxu3 }
0x20e2   :  { %v1688_v7 = vadd.f32 %v1687_v38, %v2567_v27 }
0x20e4   :  { %2090 = vtanh.f32 %v1688_v7  ;;  %v1893_v56 = vmul.f32 -1.442695, %v1688_v7 }
0x20e6   :  { %2092 = vpow2.f32 %v1893_v56 }
0x20ea   :  { %v2091_v8 = vpop.eup %2090 }
0x20eb   :  { %1712 = vrot.lane.b32.xlu2 %v2091_v8, %s2164_s22 }
0x20ec   :  { %v2093_v19 = vpop.eup %2092 }
0x20ed   :  { %v1693_v36 = vadd.f32 1.0, %v2093_v19 }
0x20ef   :  { %2094 = vrcp.f32 %v1693_v36  ;;  %v1705_v30 = vand.u32 2147483648, %v1693_v36  ;;  %vm1699_vm2 = vweird.f32 %v1693_v36  ;;  %v1703_v32 = vand.u32 2147483647, %v1693_v36 }
0x20f1   :  { %v1706_v40 = vor.u32 1.1754944e-38, %v1705_v30  ;;  %vm1704_vm4 = vcmp.eq.f32.partialorder %v1703_v32, 8.507059e+37 }
0x20f5   :  { %v2095_v20 = vpop.eup %2094 }
0x20f6   :  { %v1695_v22 = vmul.f32 %v2095_v20, %v1693_v36  ;;  %vm1700_vm1 = vweird.f32 %v2095_v20 }
0x20f7   :  { %vm1701_vm3 = vmor %vm1699_vm2, %vm1700_vm1 }
0x20f8   :  { %v1696_v10 = vsub.f32 1.0, %v1695_v22 }
0x20fa   :  { %v1697_v24 = vmul.f32 %v2095_v20, %v1696_v10 }
0x20fc   :  { %v1698_v25 = vadd.f32 %v2095_v20, %v1697_v24 }
0x20fe   :  { %v1702_v27 = vsel %vm1701_vm3, %v2095_v20, %v1698_v25 }
0x20ff   :  { %v1707_v47 = vsel %vm1704_vm4, %v1706_v40, %v1702_v27 }
0x2100   :  { %v1710_v31 = vmul.f32 %v1707_v47, %v2603_v57 }
0x2145   :  { %v1713_v44 = vpop.permute.xlu2 %1712 }
0x2146   :  { %v1715_v48 = vmul.f32 %v1713_v44, %v1707_v47 }
0x2148   :  { %1717 = vrot.lane.b32.xlu0 %v1715_v48, %s2164_s22 }
0x2150   :  { %1731 = vrot.lane.b32.xlu0 %v2619_v34, %s2166_s24 }
0x2158   :  { %1355 = vrot.lane.b32.xlu0 %v2512_v29, %s2170_s0 }
0x21ba   :  { %v1718_v50 = vpop.permute.xlu0 %1717 }
0x21bb   :  { %v1720_v52 = vadd.f32 %v1718_v50, %v1710_v31 }
0x21bd   :  { %2096 = vtanh.f32 %v1720_v52 }
0x21c2   :  { %v1732_v26 = vpop.permute.xlu0 %1731 }
0x21c3   :  { %v2097_v53 = vpop.eup %2096 }
0x21c4   :  { %1723 = vrot.lane.b32.xlu1 %v2097_v53, %s2164_s22 }
0x21ca   :  { %v1356_v43 = vpop.permute.xlu0 %1355 }
0x21cb   :  { %v1505_v23 = vmul.f32 %v2591_v42, %v1356_v43  ;;  %v1358_v14 = vmul.f32 %v1356_v43, %v2560_v21  ;;  %v1650_v45 = vmul.f32 %v2619_v34, %v1356_v43 }
0x21cd   :  { %1507 = vrot.lane.b32.xlu0 %v1505_v23, %s2165_s23 }
0x2236   :  { %v1724_v46 = vpop.permute.xlu1 %1723 }
0x2237   :  { %v1726_v41 = vmul.f32 %v1724_v46, %v1707_v47 }
0x2239   :  { %1728 = vrot.lane.b32.xlu2 %v1726_v41, %s2165_s23 }
0x223f   :  { %v1508_v21 = vpop.permute.xlu0 %1507 }
0x2240   :  { %v1510_v5 = vsel %vm1363_vm9, %v1508_v21, 0.0 }
0x2293   :  { %v1729_v58 = vpop.permute.xlu2 %1728 }
0x2294   :  { %v1734_v59 = vsel %vm103_vm6, %v1729_v58, %v1732_v26 }
0x2295   :  { %1894 = vmatmul.msk.f32.vlgmr.msrb.gmra.mxu0 %vm171_vm7, %v1734_v59 }
0x2312   :  { %v1755_v57 = vpop.f32.mrf.mxu0 }
0x2313   :  { %v1756_v54 = vadd.f32 %v1755_v57, %v2548_v6 }
0x2315   :  { %2098 = vtanh.f32 %v1756_v54  ;;  %v1895_v28 = vmul.f32 -1.442695, %v1756_v54 }
0x2317   :  { %2100 = vpow2.f32 %v1895_v28 }
0x231b   :  { %v2099_v60 = vpop.eup %2098 }
0x231c   :  { %1780 = vrot.lane.b32.xlu1 %v2099_v60, %s2164_s22 }
0x231d   :  { %v2101_v42 = vpop.eup %2100 }
0x231e   :  { %v1761_v63 = vadd.f32 1.0, %v2101_v42 }
0x2320   :  { %2102 = vrcp.f32 %v1761_v63  ;;  %v1773_v9 = vand.u32 2147483648, %v1761_v63  ;;  %vm1767_vm7 = vweird.f32 %v1761_v63  ;;  %v1771_v49 = vand.u32 2147483647, %v1761_v63 }
0x2322   :  { %v1774_v11 = vor.u32 1.1754944e-38, %v1773_v9  ;;  %vm1772_vm8 = vcmp.eq.f32.partialorder %v1771_v49, 8.507059e+37 }
0x2326   :  { %v2103_v61 = vpop.eup %2102 }
0x2327   :  { %v1763_v2 = vmul.f32 %v2103_v61, %v1761_v63  ;;  %vm1768_vm6 = vweird.f32 %v2103_v61 }
0x2328   :  { %vm1769_vm5 = vmor %vm1767_vm7, %vm1768_vm6 }
0x2329   :  { %v1764_v3 = vsub.f32 1.0, %v1763_v2 }
0x232b   :  { %v1765_v51 = vmul.f32 %v2103_v61, %v1764_v3 }
0x232d   :  { %v1766_v62 = vadd.f32 %v2103_v61, %v1765_v51 }
0x232f   :  { %v1770_v6 = vsel %vm1769_vm5, %v2103_v61, %v1766_v62 }
0x2330   :  { %v1775_v4 = vsel %vm1772_vm8, %v1774_v11, %v1770_v6 }
0x2331   :  { %v1778_v55 = vmul.f32 %v1775_v4, %v2615_v1 }
0x238e   :  { %v1781_v12 = vpop.permute.xlu1 %1780 }
0x238f   :  { %v1783_v13 = vmul.f32 %v1781_v12, %v1775_v4 }
0x2391   :  { %1785 = vrot.lane.b32.xlu2 %v1783_v13, %s2164_s22 }
0x2399   :  { %1360 = vrot.lane.b32.xlu2 %v1358_v14, %s2165_s23 }
0x23eb   :  { %v1786_v15 = vpop.permute.xlu2 %1785 }
0x23ec   :  { %v1788_v16 = vadd.f32 %v1786_v15, %v1778_v55 }
0x23ee   :  { %2104 = vtanh.f32 %v1788_v16 }
0x23f3   :  { %v1361_v17 = vpop.permute.xlu2 %1360 }
0x23f4   :  { %v2105_v18 = vpop.eup %2104  ;;  %v1364_v0 = vsel %vm1363_vm9, %v1361_v17, 0.0 }
0x23f5   :  { %1365 = vadd.xlane.f32.xlu0 %v1364_v0  ;;  %1791 = vrot.lane.b32.xlu1 %v2105_v18, %s2164_s22 }
0x23fd   :  { %1652 = vrot.lane.b32.xlu1 %v1650_v45, %s2165_s23 }
0x2427   :  { %1511 = vadd.xlane.f32.xlu1 %v1510_v5 }
0x2467   :  { %v1792_v1 = vpop.permute.xlu1 %1791 }
0x2468   :  { %v1794_v33 = vmul.f32 %v1792_v1, %v1775_v4  ;;  %v1366_v35 = vpop.xlane.xlu0 %1365 }
0x2469   :  { %v1367_v37 = vadd.f32 %v1366_v35, %v2512_v29 }
0x246a   :  { %v1795_v39 = vmul.f32 %v1794_v33, %v1356_v43 }
0x246b   :  { %1805 = vrot.lane.b32.xlu0 %v1367_v37, %s2171_s5 }
0x246c   :  { %1797 = vrot.lane.b32.xlu2 %v1795_v39, %s2165_s23 }
0x246f   :  { %v1653_v38 = vpop.permute.xlu1 %1652 }
0x2470   :  { %v1655_v7 = vsel %vm1363_vm9, %v1653_v38, 0.0 }
0x2495   :  { %1656 = vadd.xlane.f32.xlu2 %v1655_v7 }
0x249a   :  { %v1512_v34 = vpop.xlane.xlu1 %1511 }
0x249b   :  { %v1513_v8 = vadd.f32 %v1512_v34, %v2512_v29 }
0x249d   :  { %1809 = vrot.lane.b32.xlu1 %v1513_v8, %s2172_s6 }
0x24c6   :  { %v1798_v56 = vpop.permute.xlu2 %1797 }
0x24c7   :  { %v1800_v19 = vsel %vm1363_vm9, %v1798_v56, 0.0 }
0x24c8   :  { %1801 = vadd.xlane.f32.xlu2 %v1800_v19 }
0x24dd   :  { %v1806_v24 = vpop.permute.xlu0 %1805 }
0x2508   :  { %v1657_v36 = vpop.xlane.xlu2 %1656 }
0x2509   :  { %v1658_v20 = vadd.f32 %v1657_v36, %v2512_v29 }
0x250b   :  { %1813 = vrot.lane.b32.xlu2 %v1658_v20, %s2173_s7 }
0x250f   :  { %v1810_v25 = vpop.permute.xlu1 %1809 }
0x2510   :  { %v1821_v32 = vsel %vm1820_vm10, %v1806_v24, %v1810_v25 }
0x253b   :  { %v1802_v22 = vpop.xlane.xlu2 %1801 }
0x253c   :  { %v1803_v10 = vadd.f32 %v1802_v22, %v2512_v29 }
0x253e   :  { %1817 = vrot.lane.b32.xlu0 %v1803_v10, %s2174_s8 }
0x2565   :  { %v1814_v30 = vpop.permute.xlu2 %1813 }
0x2566   :  { %v1823_v27 = vsel %vm1822_vm11, %v1821_v32, %v1814_v30 }
0x25b0   :  { %v1818_v40 = vpop.permute.xlu0 %1817 }
0x25b1   :  { %v1825_v29 = vsel %vm1824_vm12, %v1823_v27, %v1818_v40 }
0x25b2   :  { %1827 = vst.msk [vmem:[#allocation5] sm:$0x3] %vm1826_vm13, %v1825_v29 }
0x25b3   :  { %1838 = dma.vmem_to_hbm [thread:$0]  %s1834_s10, 32, %s1836_s13, [#allocation4]  }
0x25b4   :  { %2158 = dma.done.wait [#allocation4], 32  }
0x25b5   :  { %2159 = vsyncadd [#allocation4], 4294967264 }
0x25b6   :  { %1843 = vsyncpa [#allocation3], 1 }
0x25b7   :  { %1844 = vsyncpa [#allocation4], 1 }

</bundles_post_ra>
